<compile_context>
chip_gen: v5e
topology: v5e:2x2
jax: 0.10.0
libtpu: 0.0.40
codegen_flags: <defaults>
</compile_context>

<pallas_src>
import jax
import jax.numpy as jnp
from jax.experimental import pallas as pl
from jax.experimental.pallas import tpu as pltpu

IN_DIM = 28 * 28                    # 784
H1, H2, OUT = 400, 200, 10          # logical (PyTorch) widths
H1_P, H2_P, OUT_P = 512, 256, 128   # lane-dense padded widths


def _mlp_kernel(x_ref, w1_ref, w2_ref, w3_ref, b_ref, o_ref):
    """Fused 3-layer MLP on one batch tile. All operands already in VMEM."""
    # In-kernel cast: x arrives as f32 (one HBM read), bf16 feeds the MXU.
    x = x_ref[...].astype(jnp.bfloat16)     # (TILE_B, 784)
    b = b_ref[...]                          # (3, H1_P) f32, packed biases

    h1 = jnp.dot(x, w1_ref[...], preferred_element_type=jnp.float32)
    h1 = jnp.maximum(h1 + b[0:1, :H1_P], 0.0).astype(jnp.bfloat16)

    h2 = jnp.dot(h1, w2_ref[...], preferred_element_type=jnp.float32)
    h2 = jnp.maximum(h2 + b[1:2, :H2_P], 0.0).astype(jnp.bfloat16)

    h3 = jnp.dot(h2, w3_ref[...], preferred_element_type=jnp.float32)
    o_ref[...] = (h3 + b[2:3, :OUT_P]).astype(o_ref.dtype)


def pack_params(params):
    """Zero-pad to lane-dense widths, cast weights to bf16, pack biases."""
    w1, b1, w2, b2, w3, b3 = params  # weights (in, out), biases (1, out), f32

    w1p = jnp.zeros((IN_DIM, H1_P), jnp.bfloat16).at[:, :H1].set(
        w1.astype(jnp.bfloat16))
    w2p = jnp.zeros((H1_P, H2_P), jnp.bfloat16).at[:H1, :H2].set(
        w2.astype(jnp.bfloat16))
    w3p = jnp.zeros((H2_P, OUT_P), jnp.bfloat16).at[:H2, :OUT].set(
        w3.astype(jnp.bfloat16))

    bias = jnp.zeros((3, H1_P), jnp.float32)
    bias = bias.at[0, :H1].set(b1[0])
    bias = bias.at[1, :H2].set(b2[0])
    bias = bias.at[2, :OUT].set(b3[0])
    return w1p, w2p, w3p, bias


def _round_up(n, m):
    return ((n + m - 1) // m) * m


def _pick_tile_b(B):
    """Batch-tile selection (always a multiple of 16 for bf16 sublane pack).

    * B < 256   : one tile, rounded up to 16 (latency path).
    * B <= 2048 : split into >=2 tiles so both v7x TensorCores get work.
    * B  > 2048 : 1024-row tiles -- amortizes the ~0.35us/step grid overhead
                  while keeping the working set well under v7x's scoped VMEM.
    """
    if B < 256:
        return max(16, _round_up(B, 16))
    if B <= 2048:
        return _round_up(pl.cdiv(B, 2), 16)
    return 1024


def perceptron_forward(x, packed):
    """x: (B, 1, 28, 28) float32 NCHW.  Returns (B, 10) float32 logits."""
    w1p, w2p, w3p, bias = packed
    B = x.shape[0]
    x2d = x.reshape(B, IN_DIM)            # same as x.view(-1, 784); stays f32

    tile_b = _pick_tile_b(B)
    grid = (pl.cdiv(B, tile_b),)          # partial last block; no jnp.pad pass

    out = pl.pallas_call(
        _mlp_kernel,
        out_shape=jax.ShapeDtypeStruct((B, OUT_P), jnp.float32),
        grid=grid,
        in_specs=[
            # x tile marches over the batch; weights/bias are grid-invariant
            # (constant index_map -> single DMA, VMEM-resident).
            pl.BlockSpec((tile_b, IN_DIM), lambda i: (i, 0)),
            pl.BlockSpec((IN_DIM, H1_P), lambda i: (0, 0)),
            pl.BlockSpec((H1_P, H2_P), lambda i: (0, 0)),
            pl.BlockSpec((H2_P, OUT_P), lambda i: (0, 0)),
            pl.BlockSpec((3, H1_P), lambda i: (0, 0)),
        ],
        out_specs=pl.BlockSpec((tile_b, OUT_P), lambda i: (i, 0)),
        compiler_params=pltpu.CompilerParams(
            dimension_semantics=("parallel",),
            # 32 MiB: <= default on v6e/v7x, raises v5e's 16 MiB default so the
            # 1024-row tile (~14-16 MiB working set) fits on every generation.
            vmem_limit_bytes=32 * 1024 * 1024,
        ),
    )(x2d, w1p, w2p, w3p, bias)

    return out[:, :OUT]


def init_params(key):
    """PyTorch-style nn.Linear init (uniform +/- 1/sqrt(fan_in)).

    Weights stored transposed (in_features, out_features) so the kernel
    computes x @ W + b; biases kept 2D (1, out).
    """
    def linear(k, fan_in, fan_out):
        kw, kb = jax.random.split(k)
        bound = 1.0 / jnp.sqrt(fan_in)
        w = jax.random.uniform(kw, (fan_in, fan_out), jnp.float32, -bound, bound)
        b = jax.random.uniform(kb, (1, fan_out), jnp.float32, -bound, bound)
        return w, b

    k1, k2, k3 = jax.random.split(key, 3)
    w1, b1 = linear(k1, IN_DIM, H1)
    w2, b2 = linear(k2, H1, H2)
    w3, b3 = linear(k3, H2, OUT)
    return (w1, b1, w2, b2, w3, b3)


def reference_forward(x, params):
    """Pure-JAX reference with the same mixed precision as the kernel."""
    w1, b1, w2, b2, w3, b3 = params
    x2d = x.reshape(x.shape[0], -1)

    def mm(a, w):
        return jnp.dot(a.astype(jnp.bfloat16), w.astype(jnp.bfloat16),
                       preferred_element_type=jnp.float32)

    h1 = jax.nn.relu(mm(x2d, w1) + b1)
    h2 = jax.nn.relu(mm(h1, w2) + b2)
    return mm(h2, w3) + b3


if __name__ == "__main__":
    key = jax.random.PRNGKey(0)
    kx, kp, kx2 = jax.random.split(key, 3)
    params = init_params(kp)
    packed = pack_params(params)

    # Small latency-path batch (single partial tile).
    x = jax.random.normal(kx, (4, 1, 28, 28), jnp.float32)  # NCHW like MNIST
    out = jax.block_until_ready(perceptron_forward(x, packed))
    ref = reference_forward(x, params)
    assert out.shape == (4, 10), out.shape
    assert jnp.allclose(out, ref, atol=1e-2, rtol=1e-2), (
        f"max abs err {jnp.max(jnp.abs(out - ref))}"
    )

    # Mid-size batch: exercises >=2 parallel tiles + a partial trailing block.
    x2 = jax.random.normal(kx2, (300, 1, 28, 28), jnp.float32)
    out2 = jax.block_until_ready(perceptron_forward(x2, packed))
    ref2 = reference_forward(x2, params)
    assert out2.shape == (300, 10), out2.shape
    assert jnp.allclose(out2, ref2, atol=1e-2, rtol=1e-2), (
        f"max abs err {jnp.max(jnp.abs(out2 - ref2))}"
    )

    print("KERNEL_OK")
</pallas_src>

<mosaic_0001>
module attributes {stable_mosaic.version = 11 : i64} {
  func.func @_mlp_kernel(%arg0: i32, %arg1: memref<16x784xf32, #tpu.memory_space<vmem>>, %arg2: memref<784x512xbf16, #tpu.memory_space<vmem>>, %arg3: memref<512x256xbf16, #tpu.memory_space<vmem>>, %arg4: memref<256x128xbf16, #tpu.memory_space<vmem>>, %arg5: memref<3x512xf32, #tpu.memory_space<vmem>>, %arg6: memref<16x128xf32, #tpu.memory_space<vmem>>) attributes {dimension_semantics = [#tpu.dimension_semantics<parallel>], iteration_bounds = array<i64: 1>, scalar_prefetch = 0 : i64, scratch_operands = 0 : i64, tpu.core_type = #tpu.core_type<tc>, window_params = [{transform_indices = @transform_0, window_bounds = array<i64: 16, 784>}, {pipeline_mode = #tpu.pipeline_mode<synchronous>, transform_indices = @transform_1, window_bounds = array<i64: 784, 512>}, {pipeline_mode = #tpu.pipeline_mode<synchronous>, transform_indices = @transform_2, window_bounds = array<i64: 512, 256>}, {pipeline_mode = #tpu.pipeline_mode<synchronous>, transform_indices = @transform_3, window_bounds = array<i64: 256, 128>}, {pipeline_mode = #tpu.pipeline_mode<synchronous>, transform_indices = @transform_4, window_bounds = array<i64: 3, 512>}, {transform_indices = @transform_5, window_bounds = array<i64: 16, 128>}]} {
    %c0 = arith.constant 0 : index
    %c0_0 = arith.constant 0 : index
    %0 = vector.load %arg1[%c0, %c0_0] : memref<16x784xf32, #tpu.memory_space<vmem>>, vector<16x784xf32>
    %1 = arith.truncf %0 : vector<16x784xf32> to vector<16x784xbf16>
    %c0_1 = arith.constant 0 : index
    %c0_2 = arith.constant 0 : index
    %2 = vector.load %arg5[%c0_1, %c0_2] : memref<3x512xf32, #tpu.memory_space<vmem>>, vector<3x512xf32>
    %c0_3 = arith.constant 0 : index
    %c0_4 = arith.constant 0 : index
    %3 = vector.load %arg2[%c0_3, %c0_4] : memref<784x512xbf16, #tpu.memory_space<vmem>>, vector<784x512xbf16>
    %cst = arith.constant dense<0.000000e+00> : vector<16x512xf32>
    %4 = tpu.matmul %1, %3, %cst {dimension_numbers = #tpu.dot_dimension_numbers<[1], [0], [0], [1], [0, 0, 1, 1], [], []>} : vector<16x784xbf16>, vector<784x512xbf16>, vector<16x512xf32> -> vector<16x512xf32>
    %5 = vector.extract_strided_slice %2 {offsets = [0, 0], sizes = [1, 512], strides = [1, 1]} : vector<3x512xf32> to vector<1x512xf32>
    %6 = vector.broadcast %5 : vector<1x512xf32> to vector<16x512xf32>
    %7 = arith.addf %4, %6 : vector<16x512xf32>
    %cst_5 = arith.constant 0.000000e+00 : f32
    %8 = vector.broadcast %cst_5 : f32 to vector<16x512xf32>
    %9 = arith.maximumf %7, %8 : vector<16x512xf32>
    %10 = arith.truncf %9 : vector<16x512xf32> to vector<16x512xbf16>
    %c0_6 = arith.constant 0 : index
    %c0_7 = arith.constant 0 : index
    %11 = vector.load %arg3[%c0_6, %c0_7] : memref<512x256xbf16, #tpu.memory_space<vmem>>, vector<512x256xbf16>
    %cst_8 = arith.constant dense<0.000000e+00> : vector<16x256xf32>
    %12 = tpu.matmul %10, %11, %cst_8 {dimension_numbers = #tpu.dot_dimension_numbers<[1], [0], [0], [1], [0, 0, 1, 1], [], []>} : vector<16x512xbf16>, vector<512x256xbf16>, vector<16x256xf32> -> vector<16x256xf32>
    %13 = vector.extract_strided_slice %2 {offsets = [1, 0], sizes = [1, 256], strides = [1, 1]} : vector<3x512xf32> to vector<1x256xf32>
    %14 = vector.broadcast %13 : vector<1x256xf32> to vector<16x256xf32>
    %15 = arith.addf %12, %14 : vector<16x256xf32>
    %cst_9 = arith.constant 0.000000e+00 : f32
    %16 = vector.broadcast %cst_9 : f32 to vector<16x256xf32>
    %17 = arith.maximumf %15, %16 : vector<16x256xf32>
    %18 = arith.truncf %17 : vector<16x256xf32> to vector<16x256xbf16>
    %c0_10 = arith.constant 0 : index
    %c0_11 = arith.constant 0 : index
    %19 = vector.load %arg4[%c0_10, %c0_11] : memref<256x128xbf16, #tpu.memory_space<vmem>>, vector<256x128xbf16>
    %cst_12 = arith.constant dense<0.000000e+00> : vector<16x128xf32>
    %20 = tpu.matmul %18, %19, %cst_12 {dimension_numbers = #tpu.dot_dimension_numbers<[1], [0], [0], [1], [0, 0, 1, 1], [], []>} : vector<16x256xbf16>, vector<256x128xbf16>, vector<16x128xf32> -> vector<16x128xf32>
    %21 = vector.extract_strided_slice %2 {offsets = [2, 0], sizes = [1, 128], strides = [1, 1]} : vector<3x512xf32> to vector<1x128xf32>
    %22 = vector.broadcast %21 : vector<1x128xf32> to vector<16x128xf32>
    %23 = arith.addf %20, %22 : vector<16x128xf32>
    %c0_13 = arith.constant 0 : index
    %c0_14 = arith.constant 0 : index
    %24 = vector.load %arg6[%c0_13, %c0_14] : memref<16x128xf32, #tpu.memory_space<vmem>>, vector<16x128xf32>
    tpu.vector_store %arg6[%c0_13, %c0_14], %23 {strides = array<i32>} : memref<16x128xf32, #tpu.memory_space<vmem>>, vector<16x128xf32>,
    return
  }
  func.func @transform_0(%arg0: i32) -> (i32, i32) {
    %c0_i32 = arith.constant 0 : i32
    %c0_i32_0 = arith.constant 0 : i32
    return %arg0, %c0_i32 : i32, i32
  }
  func.func @transform_1(%arg0: i32) -> (i32, i32) {
    %c0_i32 = arith.constant 0 : i32
    %c0_i32_0 = arith.constant 0 : i32
    %c0_i32_1 = arith.constant 0 : i32
    return %c0_i32, %c0_i32_0 : i32, i32
  }
  func.func @transform_2(%arg0: i32) -> (i32, i32) {
    %c0_i32 = arith.constant 0 : i32
    %c0_i32_0 = arith.constant 0 : i32
    %c0_i32_1 = arith.constant 0 : i32
    return %c0_i32, %c0_i32_0 : i32, i32
  }
  func.func @transform_3(%arg0: i32) -> (i32, i32) {
    %c0_i32 = arith.constant 0 : i32
    %c0_i32_0 = arith.constant 0 : i32
    %c0_i32_1 = arith.constant 0 : i32
    return %c0_i32, %c0_i32_0 : i32, i32
  }
  func.func @transform_4(%arg0: i32) -> (i32, i32) {
    %c0_i32 = arith.constant 0 : i32
    %c0_i32_0 = arith.constant 0 : i32
    %c0_i32_1 = arith.constant 0 : i32
    return %c0_i32, %c0_i32_0 : i32, i32
  }
  func.func @transform_5(%arg0: i32) -> (i32, i32) {
    %c0_i32 = arith.constant 0 : i32
    %c0_i32_0 = arith.constant 0 : i32
    return %arg0, %c0_i32 : i32, i32
  }
}

</mosaic_0001>

<bundles_post_ra>
// kernel: tpu_custom_call.1
= control target key start
LH: loop header
LB: loop body
LE: loop exit
PB: predicated region body
PF: predicated region fallthrough
CT: control target
= control target key end

     0   :  { %10 = vsyncpa [#allocation3], 0  ;;  %s4158_s0 = inlined_call_operand.hbm [shape: f32[4,784], index: 0, kind: input, shape index: {}]   ;;  %s4159_s1 = inlined_call_operand.hbm [shape: bf16[784,512], index: 1, kind: input, shape index: {}]   ;;  %s4160_s2 = inlined_call_operand.hbm [shape: bf16[512,256], index: 2, kind: input, shape index: {}]   ;;  %s4161_s3 = inlined_call_operand.hbm [shape: bf16[256,128], index: 3, kind: input, shape index: {}]   ;;  %s4162_s4 = inlined_call_operand.hbm [shape: f32[3,512], index: 4, kind: input, shape index: {}]   ;;  %s4163_s5 = inlined_call_operand.hbm [shape: f32[4,128], index: 5, kind: output, shape index: {}]  }
   0x1   :  { %11 = vsyncpa [#allocation6], 0 }
   0x2   :  { %12 = vsyncpa [#allocation9], 0 }
   0x3   :  { %13 = vsyncpa [#allocation4], 0  ;;  %s31_s20 = sshll.u32 %s4159_s1, 4  ;;  %s32_s20 = int_to_ptr.hbm [resolvable:$true] %s31_s20 }
   0x4   :  { %17 = vsyncadd [#allocation3], 1344  ;;  %s4026_s21 = smov [#allocation5]   ;;  %s57_s25 = sshll.u32 %s4161_s3, 4  ;;  %s58_s25 = int_to_ptr.hbm [resolvable:$true] %s57_s25 }
   0x5   :  { %s33_s22 = sshll.u32 %s4026_s21, 4  ;;  %s4027_s26 = smov 256   ;;  %s34_s22 = int_to_ptr.vmem [resolvable:$true] %s33_s22 }
   0x6   :  { %s4028_s27 = smov 16   ;;  %s4029_s28 = smov [#allocation8]  }
   0x7   :  { %39 = dma.hbm_to_vmem [thread:$0]  %s32_s20, 25088, %s34_s22, [#allocation6], %s4027_s26, %s4027_s26, %s4028_s27  }
   0x8   :  { %s59_s29 = sshll.u32 %s4029_s28, 4  ;;  %s4030_s30 = smov 64   ;;  %s60_s29 = int_to_ptr.vmem [resolvable:$true] %s59_s29 }
   0x9   :  { %s4031_s6 = smov 4   ;;  %s18_s8 = sshll.u32 %s4158_s0, 4  ;;  %s19_s8 = int_to_ptr.hbm [resolvable:$true] %s18_s8 }
   0xa   :  { %65 = dma.hbm_to_vmem [thread:$0]  %s58_s25, 2048, %s60_s29, [#allocation9], %s4030_s30, %s4030_s30, %s4031_s6  }
   0xb   :  { %s4032_s9 = smov [#allocation2]   ;;  %s44_s12 = sshll.u32 %s4160_s2, 4  ;;  %s45_s12 = int_to_ptr.hbm [resolvable:$true] %s44_s12 }
   0xc   :  { %s20_s3 = sshll.u32 %s4032_s9, 4  ;;  %s4033_s13 = smov 448   ;;  %s21_s3 = int_to_ptr.vmem [resolvable:$true] %s20_s3 }
   0xd   :  { %s4034_s14 = smov 28   ;;  %s4035_s15 = smov [#allocation7]  }
   0xe   :  { %26 = dma.hbm_to_vmem [thread:$0]  %s19_s8, 448, %s21_s3, [#allocation3], %s4033_s13, %s4033_s13, %s4034_s14  }
   0xf   :  { %s46_s16 = sshll.u32 %s4035_s15, 4  ;;  %s4036_s17 = smov 128   ;;  %s47_s16 = int_to_ptr.vmem [resolvable:$true] %s46_s16 }
  0x10   :  { %s4037_s18 = smov 8   ;;  %s71_s20 = sshll.u32 %s4162_s4, 4  ;;  %s72_s20 = int_to_ptr.hbm [resolvable:$true] %s71_s20 }
  0x11   :  { %52 = dma.hbm_to_vmem [thread:$0]  %s45_s12, 8192, %s47_s16, [#allocation6], %s4036_s17, %s4036_s17, %s4037_s18  }
  0x12   :  { %s4038_s21 = smov [#allocation10]  }
  0x13   :  { %s73_s22 = sshll.u32 %s4038_s21, 4  ;;  %s74_s22 = int_to_ptr.vmem [resolvable:$true] %s73_s22 }
  0x14   :  { %76 = dma.hbm_to_vmem [thread:$0]  %s72_s20, 256, %s74_s22, [#allocation9]  }
  0x15   :  { %4018 = dma.done.wait [#allocation3], 1792  }
  0x16   :  { %4019 = vsyncadd [#allocation3], 4294965504 }
  0x17   :  { %4020 = dma.done.wait [#allocation6], 33280  }
  0x18   :  { %4021 = vsyncadd [#allocation6], 4294934016 }
  0x19   :  { %4022 = dma.done.wait [#allocation9], 2304  }
  0x1a   :  { %4023 = vsyncadd [#allocation9], 4294964992  ;;  %v2590_v0 = vld [vmem:[#allocation5 + $0xe0] sm:$0xf]  ;;  %v3614_v1 = vld [vmem:[#allocation5 + $0xec] sm:$0xf0] }
  0x1b   :  { %v2718_v2 = vld [vmem:[#allocation5 + $0x1e0] sm:$0xf]  ;;  %v2591_v3 = vor.u32 %v3614_v1, %v2590_v0  ;;  %v3646_v4 = vld [vmem:[#allocation5 + $0x1ec] sm:$0xf0]  ;;  %vm1380_vm0 = vcmask 130048  }
  0x1c   :  { %v2846_v5 = vld [vmem:[#allocation5 + $0x2e0] sm:$0xf]  ;;  %v3678_v6 = vld [vmem:[#allocation5 + $0x2ec] sm:$0xf0]  ;;  %v2719_v7 = vor.u32 %v3646_v4, %v2718_v2 }
  0x1d   :  { %v2847_v8 = vor.u32 %v3678_v6, %v2846_v5  ;;  %v2974_v9 = vld [vmem:[#allocation5 + $0x3e0] sm:$0xf]  ;;  %v3710_v10 = vld [vmem:[#allocation5 + $0x3ec] sm:$0xf0]  ;;  %1384 = vmatpush.bf16.msra.mxu0 %v2591_v3 }
  0x1e   :  { %v2574_v11 = vld [vmem:[#allocation5 + $0xc0] sm:$0xf]  ;;  %v2975_v12 = vor.u32 %v3710_v10, %v2974_v9  ;;  %v3610_v13 = vld [vmem:[#allocation5 + $0xcc] sm:$0xf0]  ;;  %1398 = vmatpush.bf16.msra.mxu1 %v2719_v7 }
  0x1f   :  { %v2702_v14 = vld [vmem:[#allocation5 + $0x1c0] sm:$0xf]  ;;  %v3642_v15 = vld [vmem:[#allocation5 + $0x1cc] sm:$0xf0]  ;;  %1412 = vmatpush.bf16.msra.mxu2 %v2847_v8  ;;  %v2575_v16 = vor.u32 %v3610_v13, %v2574_v11 }
  0x20   :  { %v2703_v17 = vor.u32 %v3642_v15, %v2702_v14  ;;  %v2830_v18 = vld [vmem:[#allocation5 + $0x2c0] sm:$0xf]  ;;  %v3674_v19 = vld [vmem:[#allocation5 + $0x2cc] sm:$0xf0]  ;;  %1426 = vmatpush.bf16.msra.mxu3 %v2975_v12 }
  0x21   :  { %v2958_v20 = vld [vmem:[#allocation5 + $0x3c0] sm:$0xf]  ;;  %v2831_v21 = vor.u32 %v3674_v19, %v2830_v18  ;;  %v3706_v22 = vld [vmem:[#allocation5 + $0x3cc] sm:$0xf0]  ;;  %1385 = vmatpush.bf16.msra.mxu0 %v2575_v16 }
  0x22   :  { %v2558_v23 = vld [vmem:[#allocation5 + $0xa0] sm:$0xf]  ;;  %v3606_v24 = vld [vmem:[#allocation5 + $0xac] sm:$0xf0]  ;;  %v2959_v25 = vor.u32 %v3706_v22, %v2958_v20  ;;  %1399 = vmatpush.bf16.msra.mxu1 %v2703_v17 }
  0x23   :  { %v2686_v26 = vld [vmem:[#allocation5 + $0x1a0] sm:$0xf]  ;;  %v3638_v27 = vld [vmem:[#allocation5 + $0x1ac] sm:$0xf0]  ;;  %v2559_v29 = vor.u32 %v3606_v24, %v2558_v23  ;;  %1413 = vmatpush.bf16.msra.mxu2 %v2831_v21  ;;  %v99_v23 = vld [vmem:[#allocation2 + $0x8] sm:$0xff] }
  0x24   :  { %v2814_v28 = vld [vmem:[#allocation5 + $0x2a0] sm:$0xf]  ;;  %v3670_v30 = vld [vmem:[#allocation5 + $0x2ac] sm:$0xf0]  ;;  %v2687_v33 = vor.u32 %v3638_v27, %v2686_v26  ;;  %1427 = vmatpush.bf16.msra.mxu3 %v2959_v25  ;;  %v103_v24 = vld [vmem:[#allocation2 + $0x24] sm:$0xff] }
  0x25   :  { %v2942_v31 = vld [vmem:[#allocation5 + $0x3a0] sm:$0xf]  ;;  %v3702_v32 = vld [vmem:[#allocation5 + $0x3ac] sm:$0xf0]  ;;  %v2815_v34 = vor.u32 %v3670_v30, %v2814_v28  ;;  %1386 = vmatpush.bf16.msra.mxu0 %v2559_v29  ;;  %134 = vst [vmem:[#allocation1 + $0x10] ss:$2 sm:$0xff] %v99_v23 }
  0x26   :  { %v2542_v35 = vld [vmem:[#allocation5 + $0x80] sm:$0xf]  ;;  %v3602_v36 = vld [vmem:[#allocation5 + $0x8c] sm:$0xf0]  ;;  %v2943_v38 = vor.u32 %v3702_v32, %v2942_v31  ;;  %1400 = vmatpush.bf16.msra.mxu1 %v2687_v33  ;;  %136 = vst [vmem:[#allocation1 + $0x11] ss:$2 sm:$0xff] %v103_v24 }
  0x27   :  { %v2670_v37 = vld [vmem:[#allocation5 + $0x180] sm:$0xf]  ;;  %v3634_v39 = vld [vmem:[#allocation5 + $0x18c] sm:$0xf0]  ;;  %v2543_v44 = vor.u32 %v3602_v36, %v2542_v35  ;;  %1414 = vmatpush.bf16.msra.mxu2 %v2815_v34 }
  0x28   :  { %v2798_v40 = vld [vmem:[#allocation5 + $0x280] sm:$0xf]  ;;  %v3666_v41 = vld [vmem:[#allocation5 + $0x28c] sm:$0xf0]  ;;  %v2671_v45 = vor.u32 %v3634_v39, %v2670_v37  ;;  %1428 = vmatpush.bf16.msra.mxu3 %v2943_v38  ;;  %v3612_v37 = vld [vmem:[#allocation5 + $0xe4] sm:$0xf] }
  0x29   :  { %v2926_v42 = vld [vmem:[#allocation5 + $0x380] sm:$0xf]  ;;  %v3698_v43 = vld [vmem:[#allocation5 + $0x38c] sm:$0xf0]  ;;  %v2799_v46 = vor.u32 %v3666_v41, %v2798_v40  ;;  %1387 = vmatpush.bf16.msra.mxu0 %v2543_v44  ;;  %v2592_v38 = vld [vmem:[#allocation5 + $0xf0] sm:$0xf0] }
  0x2a   :  { %v2526_v47 = vld [vmem:[#allocation5 + $0x60] sm:$0xf]  ;;  %v3598_v48 = vld [vmem:[#allocation5 + $0x6c] sm:$0xf0]  ;;  %v2927_v50 = vor.u32 %v3698_v43, %v2926_v42  ;;  %1401 = vmatpush.bf16.msra.mxu1 %v2671_v45 }
  0x2b   :  { %v2654_v49 = vld [vmem:[#allocation5 + $0x160] sm:$0xf]  ;;  %v3630_v51 = vld [vmem:[#allocation5 + $0x16c] sm:$0xf0]  ;;  %v2527_v56 = vor.u32 %v3598_v48, %v2526_v47  ;;  %1415 = vmatpush.bf16.msra.mxu2 %v2799_v46  ;;  %v2595_v48 = vor.u32 %v3612_v37, %v2592_v38 }
  0x2c   :  { %v2782_v52 = vld [vmem:[#allocation5 + $0x260] sm:$0xf]  ;;  %v3662_v53 = vld [vmem:[#allocation5 + $0x26c] sm:$0xf0]  ;;  %v2655_v57 = vor.u32 %v3630_v51, %v2654_v49  ;;  %1429 = vmatpush.bf16.msra.mxu3 %v2927_v50 }
  0x2d   :  { %v2910_v54 = vld [vmem:[#allocation5 + $0x360] sm:$0xf]  ;;  %v3694_v55 = vld [vmem:[#allocation5 + $0x36c] sm:$0xf0]  ;;  %v2783_v58 = vor.u32 %v3662_v53, %v2782_v52  ;;  %1388 = vmatpush.bf16.msra.mxu0 %v2527_v56  ;;  %v106_v53 = vld [vmem:[#allocation2 + $0x38] sm:$0xff] }
  0x2e   :  { %v2510_v59 = vld [vmem:[#allocation5 + $0x40] sm:$0xf]  ;;  %v3594_v60 = vld [vmem:[#allocation5 + $0x4c] sm:$0xf0]  ;;  %v2911_v62 = vor.u32 %v3694_v55, %v2910_v54  ;;  %1402 = vmatpush.bf16.msra.mxu1 %v2655_v57  ;;  %v3608_v55 = vld [vmem:[#allocation5 + $0xc4] sm:$0xf] }
  0x2f   :  { %v2638_v61 = vld [vmem:[#allocation5 + $0x140] sm:$0xf]  ;;  %v3626_v63 = vld [vmem:[#allocation5 + $0x14c] sm:$0xf0]  ;;  %v2511_v4 = vor.u32 %v3594_v60, %v2510_v59  ;;  %1416 = vmatpush.bf16.msra.mxu2 %v2783_v58  ;;  %v2576_v56 = vld [vmem:[#allocation5 + $0xd0] sm:$0xf0] }
  0x30   :  { %v2766_v0 = vld [vmem:[#allocation5 + $0x240] sm:$0xf]  ;;  %v3658_v1 = vld [vmem:[#allocation5 + $0x24c] sm:$0xf0]  ;;  %v2639_v6 = vor.u32 %v3626_v63, %v2638_v61  ;;  %1430 = vmatpush.bf16.msra.mxu3 %v2911_v62  ;;  %v110_v59 = vld [vmem:[#allocation2 + $0x54] sm:$0xff] }
  0x31   :  { %v2894_v2 = vld [vmem:[#allocation5 + $0x340] sm:$0xf]  ;;  %v3690_v3 = vld [vmem:[#allocation5 + $0x34c] sm:$0xf0]  ;;  %v2767_v7 = vor.u32 %v3658_v1, %v2766_v0  ;;  %1389 = vmatpush.bf16.msra.mxu0 %v2511_v4  ;;  %v2560_v4 = vld [vmem:[#allocation5 + $0xb0] sm:$0xf0] }
  0x32   :  { %v2494_v5 = vld [vmem:[#allocation5 + $0x20] sm:$0xf]  ;;  %v3590_v8 = vld [vmem:[#allocation5 + $0x2c] sm:$0xf0]  ;;  %v2895_v11 = vor.u32 %v3690_v3, %v2894_v2  ;;  %1403 = vmatpush.bf16.msra.mxu1 %v2639_v6  ;;  %v2579_v2 = vor.u32 %v3608_v55, %v2576_v56  ;;  %v3604_v3 = vld [vmem:[#allocation5 + $0xa4] sm:$0xf] }
  0x33   :  { %v2622_v9 = vld [vmem:[#allocation5 + $0x120] sm:$0xf]  ;;  %v3622_v10 = vld [vmem:[#allocation5 + $0x12c] sm:$0xf0]  ;;  %v2495_v18 = vor.u32 %v3590_v8, %v2494_v5  ;;  %1417 = vmatpush.bf16.msra.mxu2 %v2767_v7  ;;  %v3644_v7 = vld [vmem:[#allocation5 + $0x1e4] sm:$0xf] }
  0x34   :  { %v2750_v12 = vld [vmem:[#allocation5 + $0x220] sm:$0xf]  ;;  %v3654_v13 = vld [vmem:[#allocation5 + $0x22c] sm:$0xf0]  ;;  %v2623_v25 = vor.u32 %v3622_v10, %v2622_v9  ;;  %1431 = vmatpush.bf16.msra.mxu3 %v2895_v11  ;;  %v2720_v8 = vld [vmem:[#allocation5 + $0x1f0] sm:$0xf0] }
  0x35   :  { %v2878_v14 = vld [vmem:[#allocation5 + $0x320] sm:$0xf]  ;;  %v3686_v15 = vld [vmem:[#allocation5 + $0x32c] sm:$0xf0]  ;;  %v2751_v26 = vor.u32 %v3654_v13, %v2750_v12  ;;  %1390 = vmatpush.bf16.msra.mxu0 %v2495_v18  ;;  %v2563_v12 = vor.u32 %v3604_v3, %v2560_v4  ;;  %v3640_v18 = vld [vmem:[#allocation5 + $0x1c4] sm:$0xf] }
  0x36   :  { %v2478_v16 = vld [vmem:[#allocation5] sm:$0xf]  ;;  %v3586_v17 = vld [vmem:[#allocation5 + $0xc] sm:$0xf0]  ;;  %v2879_v30 = vor.u32 %v3686_v15, %v2878_v14  ;;  %1404 = vmatpush.bf16.msra.mxu1 %v2623_v25 }
  0x37   :  { %v2606_v19 = vld [vmem:[#allocation5 + $0x100] sm:$0xf]  ;;  %v3618_v20 = vld [vmem:[#allocation5 + $0x10c] sm:$0xf0]  ;;  %v2479_v36 = vor.u32 %v3586_v17, %v2478_v16  ;;  %1418 = vmatpush.bf16.msra.mxu2 %v2751_v26  ;;  %v3600_v16 = vld [vmem:[#allocation5 + $0x84] sm:$0xf] }
  0x38   :  { %v2734_v21 = vld [vmem:[#allocation5 + $0x200] sm:$0xf]  ;;  %v3650_v22 = vld [vmem:[#allocation5 + $0x20c] sm:$0xf0]  ;;  %v2607_v39 = vor.u32 %v3618_v20, %v2606_v19  ;;  %1432 = vmatpush.bf16.msra.mxu3 %v2879_v30  ;;  %v2544_v17 = vld [vmem:[#allocation5 + $0x90] sm:$0xf0] }
  0x39   :  { %v2862_v27 = vld [vmem:[#allocation5 + $0x300] sm:$0xf]  ;;  %v3682_v28 = vld [vmem:[#allocation5 + $0x30c] sm:$0xf0]  ;;  %v2735_v40 = vor.u32 %v3650_v22, %v2734_v21  ;;  %1391 = vmatpush.bf16.msra.mxu0 %v2479_v36  ;;  %v2704_v19 = vld [vmem:[#allocation5 + $0x1d0] sm:$0xf0]  ;;  %v2723_v21 = vor.u32 %v3644_v7, %v2720_v8 }
  0x3a   :  { %v3102_v29 = vld [vmem:[#allocation5 + $0x4e0] sm:$0xf]  ;;  %v3742_v31 = vld [vmem:[#allocation5 + $0x4ec] sm:$0xf0]  ;;  %v2863_v43 = vor.u32 %v3682_v28, %v2862_v27  ;;  %1405 = vmatpush.bf16.msra.mxu1 %v2607_v39  ;;  %v2547_v27 = vor.u32 %v3600_v16, %v2544_v17  ;;  %v2707_v36 = vor.u32 %v3640_v18, %v2704_v19  ;;  %v3636_v39 = vld [vmem:[#allocation5 + $0x1a4] sm:$0xf] }
  0x3b   :  { %v3230_v32 = vld [vmem:[#allocation5 + $0x5e0] sm:$0xf]  ;;  %v3774_v33 = vld [vmem:[#allocation5 + $0x5ec] sm:$0xf0]  ;;  %v3103_v44 = vor.u32 %v3742_v31, %v3102_v29  ;;  %1419 = vmatpush.bf16.msra.mxu2 %v2735_v40  ;;  %v2688_v40 = vld [vmem:[#allocation5 + $0x1b0] sm:$0xf0] }
  0x3c   :  { %v98_v34 = vld [vmem:[#allocation2] sm:$0xff]  ;;  %v3246_v41 = vld [vmem:[#allocation5 + $0x600] sm:$0xf]  ;;  %v3231_v47 = vor.u32 %v3774_v33, %v3230_v32  ;;  %v147_v57 = vld.sshfl [vmem:[#allocation1 + $0x10] sm:$0xff pattern:$0x75316420]  ;;  %1433 = vmatpush.bf16.msra.mxu3 %v2863_v43 }
  0x3d   :  { %v102_v35 = vld [vmem:[#allocation2 + $0x1c] sm:$0xff]  ;;  %130 = vst [vmem:[#allocation1] ss:$2 sm:$0xff] %v98_v34  ;;  %v3086_v49 = vld [vmem:[#allocation5 + $0x4c0] sm:$0xf]  ;;  %1440 = vmatpush.bf16.msrb.mxu0 %v3103_v44 }
  0x3e   :  { %v3778_v42 = vld [vmem:[#allocation5 + $0x60c] sm:$0xf0]  ;;  %132 = vst [vmem:[#allocation1 + $0x1] ss:$2 sm:$0xff] %v102_v35  ;;  %v3214_v51 = vld [vmem:[#allocation5 + $0x5c0] sm:$0xf]  ;;  %1454 = vmatpush.bf16.msrb.mxu1 %v3231_v47 }
  0x3f   :  { %v107_v45 = vld [vmem:[#allocation2 + $0x40] sm:$0xff]  ;;  %v3247_v52 = vor.u32 %v3778_v42, %v3246_v41  ;;  %v148_v58 = vld.sshfl [vmem:[#allocation1 + $0x18] sm:$0xff pattern:$0x75316420] }
  0x40   :  { %v111_v46 = vld [vmem:[#allocation2 + $0x5c] sm:$0xff]  ;;  %v3070_v60 = vld [vmem:[#allocation5 + $0x4a0] sm:$0xf]  ;;  %154 = vst [vmem:[#allocation1 + $0x10] ss:$2 sm:$0xff] %v107_v45  ;;  %1482 = vmatpush.bf16.msrb.mxu3 %v2595_v48 }
  0x41   :  { %v3738_v50 = vld [vmem:[#allocation5 + $0x4cc] sm:$0xf0]  ;;  %v3198_v63 = vld [vmem:[#allocation5 + $0x5a0] sm:$0xf]  ;;  %155 = vst [vmem:[#allocation1 + $0x11] ss:$2 sm:$0xff] %v111_v46  ;;  %1475 = vmatpush.bf16.msrb.mxu2 %v3247_v52 }
  0x42   :  { %v3770_v54 = vld [vmem:[#allocation5 + $0x5cc] sm:$0xf0]  ;;  %v3087_v62 = vor.u32 %v3738_v50, %v3086_v49  ;;  %v3054_v10 = vld [vmem:[#allocation5 + $0x480] sm:$0xf]  ;;  %v3596_v32 = vld [vmem:[#allocation5 + $0x64] sm:$0xf] }
  0x43   :  { %v3734_v61 = vld [vmem:[#allocation5 + $0x4ac] sm:$0xf0]  ;;  %v3215_v1 = vor.u32 %v3770_v54, %v3214_v51  ;;  %v3182_v14 = vld [vmem:[#allocation5 + $0x580] sm:$0xf]  ;;  %v2528_v33 = vld [vmem:[#allocation5 + $0x70] sm:$0xf0] }
  0x44   :  { %v3766_v0 = vld [vmem:[#allocation5 + $0x5ac] sm:$0xf0]  ;;  %1441 = vmatpush.bf16.msrb.mxu0 %v3087_v62  ;;  %v3071_v9 = vor.u32 %v3734_v61, %v3070_v60  ;;  %1483 = vmatpush.bf16.msrb.mxu3 %v2579_v2  ;;  %v3038_v28 = vld [vmem:[#allocation5 + $0x460] sm:$0xf]  ;;  %v2531_v43 = vor.u32 %v3596_v32, %v2528_v33  ;;  %v3592_v48 = vld [vmem:[#allocation5 + $0x44] sm:$0xf] }
  0x45   :  { %v145_v5 = vld.sshfl [vmem:[#allocation1] sm:$0xff pattern:$0x75316420]  ;;  %v146_v6 = vld.sshfl [vmem:[#allocation1 + $0x8] sm:$0xff pattern:$0x75316420]  ;;  %1455 = vmatpush.bf16.msrb.mxu1 %v3215_v1  ;;  %v3199_v11 = vor.u32 %v3766_v0, %v3198_v63 }
  0x46   :  { %152 = vst [vmem:[#allocation1] ss:$2 sm:$0xff] %v106_v53  ;;  %v3730_v13 = vld [vmem:[#allocation5 + $0x48c] sm:$0xf0]  ;;  %v3166_v30 = vld [vmem:[#allocation5 + $0x560] sm:$0xf]  ;;  %v2691_v53 = vor.u32 %v3636_v39, %v2688_v40 }
  0x47   :  { %153 = vst [vmem:[#allocation1 + $0x1] ss:$2 sm:$0xff] %v110_v59  ;;  %v3762_v15 = vld [vmem:[#allocation5 + $0x58c] sm:$0xf0]  ;;  %v3055_v23 = vor.u32 %v3730_v13, %v3054_v10  ;;  %v3022_v44 = vld [vmem:[#allocation5 + $0x440] sm:$0xf] }
  0x48   :  { %v162_v20 = vld.sshfl [vmem:[#allocation1 + $0x10] sm:$0xff pattern:$0x75316420]  ;;  %v163_v22 = vld.sshfl [vmem:[#allocation1 + $0x18] sm:$0xff pattern:$0x75316420]  ;;  %1442 = vmatpush.bf16.msrb.mxu0 %v3071_v9  ;;  %v3183_v24 = vor.u32 %v3762_v15, %v3182_v14  ;;  %1484 = vmatpush.bf16.msrb.mxu3 %v2563_v12 }
  0x49   :  { %v4088_v25 = vpack.c.bf16 %v162_v20, %v147_v57  ;;  %v4090_v26 = vpack.c.bf16 %v163_v22, %v148_v58  ;;  %1456 = vmatpush.bf16.msrb.mxu1 %v3199_v11  ;;  %v3726_v29 = vld [vmem:[#allocation5 + $0x46c] sm:$0xf0]  ;;  %v3150_v46 = vld [vmem:[#allocation5 + $0x540] sm:$0xf]  ;;  %v2512_v49 = vld [vmem:[#allocation5 + $0x50] sm:$0xf0] }
  0x4a   :  { %v3758_v31 = vld [vmem:[#allocation5 + $0x56c] sm:$0xf0]  ;;  %v3039_v41 = vor.u32 %v3726_v29, %v3038_v28  ;;  %v3632_v50 = vld [vmem:[#allocation5 + $0x184] sm:$0xf]  ;;  %v101_v51 = vld [vmem:[#allocation2 + $0x18] sm:$0xf]  ;;  %v2515_v58 = vor.u32 %v3592_v48, %v2512_v49 }
  0x4b   :  { %1420 = vmatmul.bf16.vlgmr.msra.gmra.mxu2 %v4088_v25  ;;  %1434 = vmatmul.bf16.vlgmr.msra.gmra.mxu3 %v4090_v26  ;;  %v3167_v42 = vor.u32 %v3758_v31, %v3166_v30  ;;  %v3722_v45 = vld [vmem:[#allocation5 + $0x44c] sm:$0xf0]  ;;  %v105_v52 = vld [vmem:[#allocation2 + $0x34] sm:$0xf]  ;;  %v2672_v54 = vld [vmem:[#allocation5 + $0x190] sm:$0xf0] }
  0x4c   :  { %1496 = vmatpush.bf16.msra.mxu2 %v2723_v21  ;;  %1443 = vmatpush.bf16.msrb.mxu0 %v3055_v23  ;;  %v3754_v47 = vld [vmem:[#allocation5 + $0x54c] sm:$0xf0]  ;;  %v3023_v55 = vor.u32 %v3722_v45, %v3022_v44  ;;  %v3006_v56 = vld [vmem:[#allocation5 + $0x420] sm:$0xf]  ;;  %142 = vst [vmem:[#allocation1 + $0x30] ss:$2 sm:$0xff] %v101_v51 }
  0x4d   :  { %1457 = vmatpush.bf16.msrb.mxu1 %v3183_v24  ;;  %1485 = vmatpush.bf16.msrb.mxu3 %v2547_v27  ;;  %v3151_v57 = vor.u32 %v3754_v47, %v3150_v46  ;;  %v3718_v59 = vld [vmem:[#allocation5 + $0x42c] sm:$0xf0]  ;;  %v3134_v60 = vld [vmem:[#allocation5 + $0x520] sm:$0xf]  ;;  %144 = vst [vmem:[#allocation1 + $0x31] ss:$2 sm:$0xff] %v105_v52 }
  0x4e   :  { %v160_v34 = vld.sshfl [vmem:[#allocation1] sm:$0xff pattern:$0x75316420]  ;;  %v161_v35 = vld.sshfl [vmem:[#allocation1 + $0x8] sm:$0xff pattern:$0x75316420] }
  0x4f   :  { %v4094_v37 = vpack.c.bf16 %v160_v34, %v145_v5  ;;  %v4096_v38 = vpack.c.bf16 %v161_v35, %v146_v6  ;;  %v3750_v61 = vld [vmem:[#allocation5 + $0x52c] sm:$0xf0]  ;;  %v3588_v62 = vld [vmem:[#allocation5 + $0x24] sm:$0xf]  ;;  %v2496_v63 = vld [vmem:[#allocation5 + $0x30] sm:$0xf0]  ;;  %v2675_v5 = vor.u32 %v3632_v50, %v2672_v54  ;;  %v3007_v6 = vor.u32 %v3718_v59, %v3006_v56 }
  0x50   :  { %1497 = vmatpush.bf16.msra.mxu2 %v2707_v36  ;;  %1444 = vmatpush.bf16.msrb.mxu0 %v3039_v41  ;;  %v3628_v0 = vld [vmem:[#allocation5 + $0x164] sm:$0xf]  ;;  %v2656_v1 = vld [vmem:[#allocation5 + $0x170] sm:$0xf0]  ;;  %v2990_v2 = vld [vmem:[#allocation5 + $0x400] sm:$0xf]  ;;  %v3135_v11 = vor.u32 %v3750_v61, %v3134_v60  ;;  %v2499_v13 = vor.u32 %v3588_v62, %v2496_v63 }
  0x51   :  { %1392 = vmatmul.bf16.vlgmr.msra.gmra.mxu0 %v4094_v37  ;;  %1406 = vmatmul.bf16.vlgmr.msra.gmra.mxu1 %v4096_v38  ;;  %v3714_v3 = vld [vmem:[#allocation5 + $0x40c] sm:$0xf0]  ;;  %v100_v4 = vld [vmem:[#allocation2 + $0x10] sm:$0xff]  ;;  %v113_v12 = vld [vmem:[#allocation2 + $0x6c] sm:$0xf]  ;;  %v2659_v22 = vor.u32 %v3628_v0, %v2656_v1 }
  0x52   :  { %1458 = vmatpush.bf16.msrb.mxu1 %v3167_v42  ;;  %1486 = vmatpush.bf16.msrb.mxu3 %v2531_v43  ;;  %v109_v7 = vld [vmem:[#allocation2 + $0x50] sm:$0xf]  ;;  %v3746_v9 = vld [vmem:[#allocation5 + $0x50c] sm:$0xf0]  ;;  %v3584_v10 = vld [vmem:[#allocation5 + $0x4] sm:$0xf]  ;;  %v2991_v24 = vor.u32 %v3714_v3, %v2990_v2 }
  0x53   :  { %v3118_v8 = vld [vmem:[#allocation5 + $0x500] sm:$0xf]  ;;  %v2480_v14 = vld [vmem:[#allocation5 + $0x10] sm:$0xf0]  ;;  %v3676_v15 = vld [vmem:[#allocation5 + $0x2e4] sm:$0xf] }
  0x54   :  { %1498 = vmatpush.bf16.msra.mxu2 %v2691_v53  ;;  %1445 = vmatpush.bf16.msrb.mxu0 %v3023_v55  ;;  %v2848_v16 = vld [vmem:[#allocation5 + $0x2f0] sm:$0xf0]  ;;  %v3708_v17 = vld [vmem:[#allocation5 + $0x3e4] sm:$0xf]  ;;  %v104_v19 = vld [vmem:[#allocation2 + $0x2c] sm:$0xff]  ;;  %v3119_v29 = vor.u32 %v3746_v9, %v3118_v8  ;;  %v2483_v30 = vor.u32 %v3584_v10, %v2480_v14 }
  0x55   :  { %v2976_v18 = vld [vmem:[#allocation5 + $0x3f0] sm:$0xf0]  ;;  %v3740_v20 = vld [vmem:[#allocation5 + $0x4e4] sm:$0xf]  ;;  %138 = vst [vmem:[#allocation1 + $0x20] ss:$2 sm:$0xff] %v100_v4  ;;  %v2851_v31 = vor.u32 %v3676_v15, %v2848_v16 }
  0x56   :  { %1459 = vmatpush.bf16.msrb.mxu1 %v3151_v57  ;;  %1487 = vmatpush.bf16.msrb.mxu3 %v2515_v58  ;;  %v3104_v21 = vld [vmem:[#allocation5 + $0x4f0] sm:$0xf0]  ;;  %v151_v23 = vld.sshfl [vmem:[#allocation1 + $0x30] sm:$0xff pattern:$0x75316420]  ;;  %v2979_v32 = vor.u32 %v3708_v17, %v2976_v18 }
  0x57   :  { %140 = vst [vmem:[#allocation1 + $0x21] ss:$2 sm:$0xff] %v104_v19  ;;  %v3624_v27 = vld [vmem:[#allocation5 + $0x144] sm:$0xf]  ;;  %v2640_v28 = vld [vmem:[#allocation5 + $0x150] sm:$0xf0]  ;;  %v3107_v34 = vor.u32 %v3740_v20, %v3104_v21 }
  0x58   :  { %1499 = vmatpush.bf16.msra.mxu2 %v2675_v5  ;;  %1446 = vmatpush.bf16.msrb.mxu0 %v3007_v6  ;;  %158 = vst [vmem:[#allocation1 + $0x30] ss:$2 sm:$0xff] %v109_v7  ;;  %v3672_v33 = vld [vmem:[#allocation5 + $0x2c4] sm:$0xf]  ;;  %v2832_v35 = vld [vmem:[#allocation5 + $0x2d0] sm:$0xf0]  ;;  %v2643_v40 = vor.u32 %v3624_v27, %v2640_v28 }
  0x59   :  { %159 = vst [vmem:[#allocation1 + $0x31] ss:$2 sm:$0xff] %v113_v12  ;;  %v3704_v36 = vld [vmem:[#allocation5 + $0x3c4] sm:$0xf]  ;;  %v2960_v39 = vld [vmem:[#allocation5 + $0x3d0] sm:$0xf0]  ;;  %v2835_v48 = vor.u32 %v3672_v33, %v2832_v35 }
  0x5a   :  { %1460 = vmatpush.bf16.msrb.mxu1 %v3135_v11  ;;  %1488 = vmatpush.bf16.msrb.mxu3 %v2499_v13  ;;  %v3620_v41 = vld [vmem:[#allocation5 + $0x124] sm:$0xf]  ;;  %v2624_v42 = vld [vmem:[#allocation5 + $0x130] sm:$0xf0]  ;;  %v108_v45 = vld [vmem:[#allocation2 + $0x48] sm:$0xff]  ;;  %v2963_v49 = vor.u32 %v3704_v36, %v2960_v39 }
  0x5b   :  { %v3736_v43 = vld [vmem:[#allocation5 + $0x4c4] sm:$0xf]  ;;  %v3088_v44 = vld [vmem:[#allocation5 + $0x4d0] sm:$0xf0]  ;;  %v2627_v59 = vor.u32 %v3620_v41, %v2624_v42 }
  0x5c   :  { %1500 = vmatpush.bf16.msra.mxu2 %v2659_v22  ;;  %1447 = vmatpush.bf16.msrb.mxu0 %v2991_v24  ;;  %v112_v46 = vld [vmem:[#allocation2 + $0x64] sm:$0xff]  ;;  %v3668_v47 = vld [vmem:[#allocation5 + $0x2a4] sm:$0xf]  ;;  %v3091_v55 = vor.u32 %v3736_v43, %v3088_v44 }
  0x5d   :  { %v2816_v50 = vld [vmem:[#allocation5 + $0x2b0] sm:$0xf0]  ;;  %v3700_v51 = vld [vmem:[#allocation5 + $0x3a4] sm:$0xf] }
  0x5e   :  { %1461 = vmatpush.bf16.msrb.mxu1 %v3119_v29  ;;  %1489 = vmatpush.bf16.msrb.mxu3 %v2483_v30  ;;  %v2944_v52 = vld [vmem:[#allocation5 + $0x3b0] sm:$0xf0]  ;;  %v149_v53 = vld.sshfl [vmem:[#allocation1 + $0x20] sm:$0xff pattern:$0x75316420]  ;;  %v2819_v0 = vor.u32 %v3668_v47, %v2816_v50 }
  0x5f   :  { %v150_v54 = vld.sshfl [vmem:[#allocation1 + $0x28] sm:$0xff pattern:$0x75316420]  ;;  %v3732_v56 = vld [vmem:[#allocation5 + $0x4a4] sm:$0xf]  ;;  %v2947_v1 = vor.u32 %v3700_v51, %v2944_v52 }
  0x60   :  { %1510 = vmatpush.bf16.msra.mxu0 %v2851_v31  ;;  %1501 = vmatpush.bf16.msra.mxu2 %v2643_v40  ;;  %156 = vst [vmem:[#allocation1 + $0x20] ss:$2 sm:$0xff] %v108_v45  ;;  %v3072_v57 = vld [vmem:[#allocation5 + $0x4b0] sm:$0xf0]  ;;  %v3616_v61 = vld [vmem:[#allocation5 + $0x104] sm:$0xf] }
  0x61   :  { %1490 = vmatmul.bf16.vlgmr.msrb.gmra.mxu3 %v4094_v37  ;;  %v166_v58 = vld.sshfl [vmem:[#allocation1 + $0x30] sm:$0xff pattern:$0x75316420]  ;;  %157 = vst [vmem:[#allocation1 + $0x21] ss:$2 sm:$0xff] %v112_v46  ;;  %v3075_v3 = vor.u32 %v3732_v56, %v3072_v57 }
  0x62   :  { %1524 = vmatpush.bf16.msra.mxu1 %v2979_v32  ;;  %1538 = vmatpush.bf16.msra.mxu3 %v3107_v34  ;;  %v4101_v60 = vpack.c.bf16 %v166_v58, %v151_v23  ;;  %v2608_v62 = vld [vmem:[#allocation5 + $0x110] sm:$0xf0]  ;;  %v3772_v63 = vld [vmem:[#allocation5 + $0x5e4] sm:$0xf] }
  0x63   :  { %v3232_v2 = vld [vmem:[#allocation5 + $0x5f0] sm:$0xf0]  ;;  %v3664_v4 = vld [vmem:[#allocation5 + $0x284] sm:$0xf]  ;;  %v2611_v7 = vor.u32 %v3616_v61, %v2608_v62 }
  0x64   :  { %1511 = vmatpush.bf16.msra.mxu0 %v2835_v48  ;;  %v2800_v5 = vld [vmem:[#allocation5 + $0x290] sm:$0xf0]  ;;  %3260 = vmatmul.msk.bf16.vlgmr.msrb.gmra.mxu2 %vm1380_vm0, %v4101_v60  ;;  %v3696_v6 = vld [vmem:[#allocation5 + $0x384] sm:$0xf]  ;;  %v3235_v11 = vor.u32 %v3772_v63, %v3232_v2 }
  0x65   :  { %1502 = vmatpush.bf16.msra.mxu2 %v2627_v59  ;;  %v2928_v8 = vld [vmem:[#allocation5 + $0x390] sm:$0xf0]  ;;  %v3728_v9 = vld [vmem:[#allocation5 + $0x484] sm:$0xf]  ;;  %v2803_v14 = vor.u32 %v3664_v4, %v2800_v5 }
  0x66   :  { %1525 = vmatpush.bf16.msra.mxu1 %v2963_v49  ;;  %1539 = vmatpush.bf16.msra.mxu3 %v3091_v55  ;;  %v3056_v10 = vld [vmem:[#allocation5 + $0x490] sm:$0xf0]  ;;  %v3768_v12 = vld [vmem:[#allocation5 + $0x5c4] sm:$0xf]  ;;  %v2931_v20 = vor.u32 %v3696_v6, %v2928_v8 }
  0x67   :  { %v3216_v13 = vld [vmem:[#allocation5 + $0x5d0] sm:$0xf0]  ;;  %v3660_v15 = vld [vmem:[#allocation5 + $0x264] sm:$0xf]  ;;  %v3059_v21 = vor.u32 %v3728_v9, %v3056_v10  ;;  %v2598_v9 = vld [vmem:[#allocation5 + $0xe8] sm:$0xf] }
  0x68   :  { %1512 = vmatpush.bf16.msra.mxu0 %v2819_v0  ;;  %v2784_v16 = vld [vmem:[#allocation5 + $0x270] sm:$0xf0]  ;;  %v3692_v17 = vld [vmem:[#allocation5 + $0x364] sm:$0xf]  ;;  %v3219_v29 = vor.u32 %v3768_v12, %v3216_v13  ;;  %v3615_v10 = vld [vmem:[#allocation5 + $0xf4] sm:$0xf0] }
  0x69   :  { %v164_v18 = vld.sshfl [vmem:[#allocation1 + $0x20] sm:$0xff pattern:$0x75316420]  ;;  %v165_v19 = vld.sshfl [vmem:[#allocation1 + $0x28] sm:$0xff pattern:$0x75316420]  ;;  %1503 = vmatpush.bf16.msra.mxu2 %v2611_v7  ;;  %v2787_v31 = vor.u32 %v3660_v15, %v2784_v16 }
  0x6a   :  { %1526 = vmatpush.bf16.msra.mxu1 %v2947_v1  ;;  %1540 = vmatpush.bf16.msra.mxu3 %v3075_v3  ;;  %v4105_v22 = vpack.c.bf16 %v164_v18, %v149_v53  ;;  %v4107_v23 = vpack.c.bf16 %v165_v19, %v150_v54  ;;  %v2912_v24 = vld [vmem:[#allocation5 + $0x370] sm:$0xf0]  ;;  %v3724_v27 = vld [vmem:[#allocation5 + $0x464] sm:$0xf]  ;;  %v2726_v12 = vld [vmem:[#allocation5 + $0x1e8] sm:$0xf] }
  0x6b   :  { %v3040_v28 = vld [vmem:[#allocation5 + $0x470] sm:$0xf0]  ;;  %v3764_v30 = vld [vmem:[#allocation5 + $0x5a4] sm:$0xf]  ;;  %v2915_v35 = vor.u32 %v3692_v17, %v2912_v24  ;;  %v3647_v13 = vld [vmem:[#allocation5 + $0x1f4] sm:$0xf0]  ;;  %v2599_v17 = vor.u32 %v3615_v10, %v2598_v9 }
  0x6c   :  { %1513 = vmatpush.bf16.msra.mxu0 %v2803_v14  ;;  %1462 = vmatmul.bf16.vlgmr.msrb.gmra.mxu1 %v4107_v23  ;;  %v3200_v32 = vld [vmem:[#allocation5 + $0x5b0] sm:$0xf0]  ;;  %v3656_v33 = vld [vmem:[#allocation5 + $0x244] sm:$0xf]  ;;  %v3043_v36 = vor.u32 %v3724_v27, %v3040_v28  ;;  %v2854_v18 = vld [vmem:[#allocation5 + $0x2e8] sm:$0xf]  ;;  %v2727_v24 = vor.u32 %v3647_v13, %v2726_v12 }
  0x6d   :  { %1552 = vmatpush.bf16.msrb.mxu2 %v3235_v11  ;;  %1448 = vmatmul.bf16.vlgmr.msrb.gmra.mxu0 %v4105_v22  ;;  %v2768_v34 = vld [vmem:[#allocation5 + $0x250] sm:$0xf0]  ;;  %v3688_v39 = vld [vmem:[#allocation5 + $0x344] sm:$0xf]  ;;  %v3203_v41 = vor.u32 %v3764_v30, %v3200_v32  ;;  %v3679_v19 = vld [vmem:[#allocation5 + $0x2f4] sm:$0xf0] }
  0x6e   :  { %1527 = vmatpush.bf16.msra.mxu1 %v2931_v20  ;;  %1541 = vmatpush.bf16.msra.mxu3 %v3059_v21  ;;  %v2896_v40 = vld [vmem:[#allocation5 + $0x350] sm:$0xf0]  ;;  %v3760_v42 = vld [vmem:[#allocation5 + $0x584] sm:$0xf]  ;;  %v2771_v43 = vor.u32 %v3656_v33, %v2768_v34  ;;  %v2582_v27 = vld [vmem:[#allocation5 + $0xc8] sm:$0xf]  ;;  %v2855_v32 = vor.u32 %v3679_v19, %v2854_v18 }
  0x6f   :  { %v3720_v44 = vld [vmem:[#allocation5 + $0x444] sm:$0xf]  ;;  %v3024_v45 = vld [vmem:[#allocation5 + $0x450] sm:$0xf0]  ;;  %v2899_v49 = vor.u32 %v3688_v39, %v2896_v40  ;;  %v3611_v28 = vld [vmem:[#allocation5 + $0xd4] sm:$0xf0] }
  0x70   :  { %1514 = vmatpush.bf16.msra.mxu0 %v2787_v31  ;;  %v3184_v46 = vld [vmem:[#allocation5 + $0x590] sm:$0xf0]  ;;  %v3652_v47 = vld [vmem:[#allocation5 + $0x224] sm:$0xf]  ;;  %v3027_v50 = vor.u32 %v3720_v44, %v3024_v45  ;;  %v2710_v30 = vld [vmem:[#allocation5 + $0x1c8] sm:$0xf]  ;;  %v2583_v33 = vor.u32 %v3611_v28, %v2582_v27 }
  0x71   :  { %1553 = vmatpush.bf16.msrb.mxu2 %v3219_v29  ;;  %v2752_v48 = vld [vmem:[#allocation5 + $0x230] sm:$0xf0]  ;;  %v3684_v51 = vld [vmem:[#allocation5 + $0x324] sm:$0xf]  ;;  %v3187_v53 = vor.u32 %v3760_v42, %v3184_v46  ;;  %v3643_v31 = vld [vmem:[#allocation5 + $0x1d4] sm:$0xf0] }
  0x72   :  { %1528 = vmatpush.bf16.msra.mxu1 %v2915_v35  ;;  %1542 = vmatpush.bf16.msra.mxu3 %v3043_v36  ;;  %v2880_v52 = vld [vmem:[#allocation5 + $0x330] sm:$0xf0]  ;;  %v3756_v54 = vld [vmem:[#allocation5 + $0x564] sm:$0xf]  ;;  %v2755_v55 = vor.u32 %v3652_v47, %v2752_v48  ;;  %v2838_v34 = vld [vmem:[#allocation5 + $0x2c8] sm:$0xf]  ;;  %v2711_v40 = vor.u32 %v3643_v31, %v2710_v30 }
  0x73   :  { %v3716_v56 = vld [vmem:[#allocation5 + $0x424] sm:$0xf]  ;;  %v3008_v57 = vld [vmem:[#allocation5 + $0x430] sm:$0xf0]  ;;  %v2883_v62 = vor.u32 %v3684_v51, %v2880_v52  ;;  %v3675_v35 = vld [vmem:[#allocation5 + $0x2d4] sm:$0xf0] }
  0x74   :  { %1515 = vmatpush.bf16.msra.mxu0 %v2771_v43  ;;  %v3168_v58 = vld [vmem:[#allocation5 + $0x570] sm:$0xf0]  ;;  %v3648_v59 = vld [vmem:[#allocation5 + $0x204] sm:$0xf]  ;;  %1504 = vmatmul.bf16.vlgmr.msra.gmra.mxu2 %v4096_v38  ;;  %v3011_v2 = vor.u32 %v3716_v56, %v3008_v57  ;;  %v3607_v42 = vld [vmem:[#allocation5 + $0xb4] sm:$0xf0]  ;;  %v2839_v48 = vor.u32 %v3675_v35, %v2838_v34 }
  0x75   :  { %1554 = vmatpush.bf16.msrb.mxu2 %v3203_v41  ;;  %v2736_v61 = vld [vmem:[#allocation5 + $0x210] sm:$0xf0]  ;;  %v3776_v63 = vld [vmem:[#allocation5 + $0x604] sm:$0xf]  ;;  %v3171_v6 = vor.u32 %v3756_v54, %v3168_v58  ;;  %v2566_v41 = vld [vmem:[#allocation5 + $0xa8] sm:$0xf] }
  0x76   :  { %1529 = vmatpush.bf16.msra.mxu1 %v2899_v49  ;;  %v3248_v0 = vld [vmem:[#allocation5 + $0x610] sm:$0xf0]  ;;  %1543 = vmatpush.bf16.msra.mxu3 %v3027_v50  ;;  %v3752_v1 = vld [vmem:[#allocation5 + $0x544] sm:$0xf]  ;;  %v2739_v7 = vor.u32 %v3648_v59, %v2736_v61  ;;  %v2694_v44 = vld [vmem:[#allocation5 + $0x1a8] sm:$0xf]  ;;  %v2567_v49 = vor.u32 %v3607_v42, %v2566_v41 }
  0x77   :  { %v3680_v3 = vld [vmem:[#allocation5 + $0x304] sm:$0xf]  ;;  %v2864_v4 = vld [vmem:[#allocation5 + $0x310] sm:$0xf0]  ;;  %v3251_v14 = vor.u32 %v3776_v63, %v3248_v0  ;;  %v3639_v45 = vld [vmem:[#allocation5 + $0x1b4] sm:$0xf0] }
  0x78   :  { %v3712_v5 = vld [vmem:[#allocation5 + $0x404] sm:$0xf]  ;;  %1516 = vmatpush.bf16.msra.mxu0 %v2755_v55  ;;  %v2992_v8 = vld [vmem:[#allocation5 + $0x410] sm:$0xf0]  ;;  %v2867_v15 = vor.u32 %v3680_v3, %v2864_v4  ;;  %v2982_v46 = vld [vmem:[#allocation5 + $0x3e8] sm:$0xf] }
  0x79   :  { %1555 = vmatpush.bf16.msrb.mxu2 %v3187_v53  ;;  %v3152_v11 = vld [vmem:[#allocation5 + $0x550] sm:$0xf0]  ;;  %v2995_v16 = vor.u32 %v3712_v5, %v2992_v8  ;;  %v3748_v21 = vld [vmem:[#allocation5 + $0x524] sm:$0xf]  ;;  %v3711_v47 = vld [vmem:[#allocation5 + $0x3f4] sm:$0xf0]  ;;  %v2695_v53 = vor.u32 %v3639_v45, %v2694_v44 }
  0x7a   :  { %1530 = vmatpush.bf16.msra.mxu1 %v2883_v62  ;;  %1544 = vmatpush.bf16.msra.mxu3 %v3011_v2  ;;  %v3155_v20 = vor.u32 %v3752_v1, %v3152_v11  ;;  %v3136_v29 = vld [vmem:[#allocation5 + $0x530] sm:$0xf0]  ;;  %v3744_v39 = vld [vmem:[#allocation5 + $0x504] sm:$0xf]  ;;  %v2822_v50 = vld [vmem:[#allocation5 + $0x2a8] sm:$0xf]  ;;  %v2983_v56 = vor.u32 %v3711_v47, %v2982_v46 }
  0x7b   :  { %v3139_v36 = vor.u32 %v3748_v21, %v3136_v29  ;;  %v3120_v43 = vld [vmem:[#allocation5 + $0x510] sm:$0xf0]  ;;  %v3671_v51 = vld [vmem:[#allocation5 + $0x2b4] sm:$0xf0]  ;;  %v2550_v54 = vld [vmem:[#allocation5 + $0x88] sm:$0xf] }
  0x7c   :  { %1517 = vmatpush.bf16.msra.mxu0 %v2739_v7  ;;  %v3123_v52 = vor.u32 %v3744_v39, %v3120_v43  ;;  %v3603_v55 = vld [vmem:[#allocation5 + $0x94] sm:$0xf0]  ;;  %v2678_v57 = vld [vmem:[#allocation5 + $0x188] sm:$0xf]  ;;  %v2823_v62 = vor.u32 %v3671_v51, %v2822_v50 }
  0x7d   :  { %1556 = vmatpush.bf16.msrb.mxu2 %v3171_v6  ;;  %v3635_v58 = vld [vmem:[#allocation5 + $0x194] sm:$0xf0]  ;;  %v2966_v59 = vld [vmem:[#allocation5 + $0x3c8] sm:$0xf]  ;;  %v2551_v63 = vor.u32 %v3603_v55, %v2550_v54 }
  0x7e   :  { %1531 = vmatpush.bf16.msra.mxu1 %v2867_v15  ;;  %1545 = vmatpush.bf16.msra.mxu3 %v2995_v16  ;;  %v3707_v61 = vld [vmem:[#allocation5 + $0x3d4] sm:$0xf0]  ;;  %v2806_v0 = vld [vmem:[#allocation5 + $0x288] sm:$0xf]  ;;  %v2679_v2 = vor.u32 %v3635_v58, %v2678_v57 }
  0x7f   :  { %1518 = vmatmul.bf16.vlgmr.msra.gmra.mxu0 %v4088_v25  ;;  %v3667_v1 = vld [vmem:[#allocation5 + $0x294] sm:$0xf0]  ;;  %v2534_v3 = vld [vmem:[#allocation5 + $0x68] sm:$0xf]  ;;  %v2967_v5 = vor.u32 %v3707_v61, %v2966_v59 }
  0x80   :  { %1573 = vmatpush.bf16.msrb.mxu0 %v3251_v14  ;;  %v3599_v4 = vld [vmem:[#allocation5 + $0x74] sm:$0xf0]  ;;  %v2662_v6 = vld [vmem:[#allocation5 + $0x168] sm:$0xf]  ;;  %v2807_v10 = vor.u32 %v3667_v1, %v2806_v0 }
  0x81   :  { %1557 = vmatpush.bf16.msrb.mxu2 %v3155_v20  ;;  %1532 = vmatmul.bf16.vlgmr.msra.gmra.mxu1 %v4090_v26  ;;  %v3631_v7 = vld [vmem:[#allocation5 + $0x174] sm:$0xf0]  ;;  %v2950_v8 = vld [vmem:[#allocation5 + $0x3a8] sm:$0xf]  ;;  %v2535_v11 = vor.u32 %v3599_v4, %v2534_v3 }
  0x82   :  { %1580 = vmatpush.bf16.msrb.mxu1 %v2599_v17  ;;  %1594 = vmatpush.bf16.msrb.mxu3 %v2727_v24  ;;  %v3703_v9 = vld [vmem:[#allocation5 + $0x3b4] sm:$0xf0]  ;;  %v2790_v12 = vld [vmem:[#allocation5 + $0x268] sm:$0xf]  ;;  %v2663_v14 = vor.u32 %v3631_v7, %v2662_v6 }
  0x83   :  { %1546 = vmatmul.bf16.vlgmr.msra.gmra.mxu3 %v4105_v22  ;;  %v3663_v13 = vld [vmem:[#allocation5 + $0x274] sm:$0xf0]  ;;  %v2518_v15 = vld [vmem:[#allocation5 + $0x48] sm:$0xf]  ;;  %v2951_v17 = vor.u32 %v3703_v9, %v2950_v8 }
  0x84   :  { %1608 = vmatpush.bf16.msra.mxu0 %v2855_v32  ;;  %v3595_v16 = vld [vmem:[#allocation5 + $0x54] sm:$0xf0]  ;;  %v2646_v18 = vld [vmem:[#allocation5 + $0x148] sm:$0xf]  ;;  %v2791_v24 = vor.u32 %v3663_v13, %v2790_v12  ;;  %v3645_v12 = vld [vmem:[#allocation5 + $0x1ec] sm:$0xf] }
  0x85   :  { %1558 = vmatpush.bf16.msrb.mxu2 %v3139_v36  ;;  %v3627_v19 = vld [vmem:[#allocation5 + $0x154] sm:$0xf0]  ;;  %v2934_v20 = vld [vmem:[#allocation5 + $0x388] sm:$0xf]  ;;  %v2519_v27 = vor.u32 %v3595_v16, %v2518_v15  ;;  %v2728_v13 = vld [vmem:[#allocation5 + $0x1f8] sm:$0xf0] }
  0x86   :  { %1581 = vmatpush.bf16.msrb.mxu1 %v2583_v33  ;;  %1595 = vmatpush.bf16.msrb.mxu3 %v2711_v40  ;;  %v3699_v21 = vld [vmem:[#allocation5 + $0x394] sm:$0xf0]  ;;  %v2774_v28 = vld [vmem:[#allocation5 + $0x248] sm:$0xf]  ;;  %v2647_v30 = vor.u32 %v3627_v19, %v2646_v18 }
  0x87   :  { %v3659_v29 = vld [vmem:[#allocation5 + $0x254] sm:$0xf0]  ;;  %v2502_v31 = vld [vmem:[#allocation5 + $0x28] sm:$0xf]  ;;  %v2935_v33 = vor.u32 %v3699_v21, %v2934_v20 }
  0x88   :  { %1609 = vmatpush.bf16.msra.mxu0 %v2839_v48  ;;  %v3591_v32 = vld [vmem:[#allocation5 + $0x34] sm:$0xf0]  ;;  %v2630_v34 = vld [vmem:[#allocation5 + $0x128] sm:$0xf]  ;;  %v2775_v40 = vor.u32 %v3659_v29, %v2774_v28  ;;  %v2731_v28 = vor.u32 %v3645_v12, %v2728_v13 }
  0x89   :  { %1559 = vmatpush.bf16.msrb.mxu2 %v3123_v52  ;;  %v3623_v35 = vld [vmem:[#allocation5 + $0x134] sm:$0xf0]  ;;  %v2918_v36 = vld [vmem:[#allocation5 + $0x368] sm:$0xf]  ;;  %v2503_v41 = vor.u32 %v3591_v32, %v2502_v31  ;;  %v2712_v31 = vld [vmem:[#allocation5 + $0x1d8] sm:$0xf0] }
  0x8a   :  { %1582 = vmatpush.bf16.msrb.mxu1 %v2567_v49  ;;  %1596 = vmatpush.bf16.msrb.mxu3 %v2695_v53  ;;  %v3695_v39 = vld [vmem:[#allocation5 + $0x374] sm:$0xf0]  ;;  %v2758_v42 = vld [vmem:[#allocation5 + $0x228] sm:$0xf]  ;;  %v2631_v45 = vor.u32 %v3623_v35, %v2630_v34 }
  0x8b   :  { %v3655_v43 = vld [vmem:[#allocation5 + $0x234] sm:$0xf0]  ;;  %v2902_v44 = vld [vmem:[#allocation5 + $0x348] sm:$0xf]  ;;  %v2919_v49 = vor.u32 %v3695_v39, %v2918_v36 }
  0x8c   :  { %1610 = vmatpush.bf16.msra.mxu0 %v2823_v62  ;;  %1560 = vmatmul.bf16.vlgmr.msrb.gmra.mxu2 %v4107_v23  ;;  %v2486_v46 = vld [vmem:[#allocation5 + $0x8] sm:$0xf]  ;;  %v3587_v47 = vld [vmem:[#allocation5 + $0x14] sm:$0xf0] }
  0x8d   :  { %1622 = vmatpush.bf16.msra.mxu2 %v2983_v56  ;;  %v2614_v48 = vld [vmem:[#allocation5 + $0x108] sm:$0xf]  ;;  %v3619_v50 = vld [vmem:[#allocation5 + $0x114] sm:$0xf0]  ;;  %v2759_v56 = vor.u32 %v3655_v43, %v2758_v42  ;;  %v2487_v57 = vor.u32 %v3587_v47, %v2486_v46  ;;  %v2584_v42 = vld [vmem:[#allocation5 + $0xd8] sm:$0xf0] }
  0x8e   :  { %1583 = vmatpush.bf16.msrb.mxu1 %v2551_v63  ;;  %1597 = vmatpush.bf16.msrb.mxu3 %v2679_v2  ;;  %v3110_v51 = vld [vmem:[#allocation5 + $0x4e8] sm:$0xf]  ;;  %v3743_v52 = vld [vmem:[#allocation5 + $0x4f4] sm:$0xf0]  ;;  %v2615_v61 = vor.u32 %v3619_v50, %v2614_v48  ;;  %v2696_v46 = vld [vmem:[#allocation5 + $0x1b8] sm:$0xf0] }
  0x8f   :  { %3261 = vmatmul.msk.bf16.vlgmr.msrb.gmra.mxu0 %vm1380_vm0, %v4101_v60  ;;  %v3691_v53 = vld [vmem:[#allocation5 + $0x354] sm:$0xf0]  ;;  %v3238_v54 = vld [vmem:[#allocation5 + $0x5e8] sm:$0xf]  ;;  %v3111_v62 = vor.u32 %v3743_v52, %v3110_v51 }
  0x90   :  { %1611 = vmatpush.bf16.msra.mxu0 %v2807_v10  ;;  %v3775_v55 = vld [vmem:[#allocation5 + $0x5f4] sm:$0xf0]  ;;  %v2742_v58 = vld [vmem:[#allocation5 + $0x208] sm:$0xf]  ;;  %v2903_v1 = vor.u32 %v3691_v53, %v2902_v44  ;;  %v3605_v53 = vld [vmem:[#allocation5 + $0xac] sm:$0xf] }
  0x91   :  { %1623 = vmatpush.bf16.msra.mxu2 %v2967_v5  ;;  %v3651_v59 = vld [vmem:[#allocation5 + $0x214] sm:$0xf0]  ;;  %v3254_v63 = vld [vmem:[#allocation5 + $0x608] sm:$0xf]  ;;  %v3239_v3 = vor.u32 %v3775_v55, %v3238_v54  ;;  %v2568_v54 = vld [vmem:[#allocation5 + $0xb8] sm:$0xf0] }
  0x92   :  { %1584 = vmatpush.bf16.msrb.mxu1 %v2535_v11  ;;  %1598 = vmatpush.bf16.msrb.mxu3 %v2663_v14  ;;  %v3779_v0 = vld [vmem:[#allocation5 + $0x614] sm:$0xf0]  ;;  %v2886_v2 = vld [vmem:[#allocation5 + $0x328] sm:$0xf]  ;;  %v2743_v9 = vor.u32 %v3651_v59, %v2742_v58  ;;  %v2680_v58 = vld [vmem:[#allocation5 + $0x198] sm:$0xf0] }
  0x93   :  { %v3094_v4 = vld [vmem:[#allocation5 + $0x4c8] sm:$0xf]  ;;  %v3739_v5 = vld [vmem:[#allocation5 + $0x4d4] sm:$0xf0]  ;;  %v3255_v10 = vor.u32 %v3779_v0, %v3254_v63  ;;  %v2571_v63 = vor.u32 %v3605_v53, %v2568_v54  ;;  %v3617_v53 = vld [vmem:[#allocation5 + $0x10c] sm:$0xf] }
  0x94   :  { %1612 = vmatpush.bf16.msra.mxu0 %v2791_v24  ;;  %v3687_v6 = vld [vmem:[#allocation5 + $0x334] sm:$0xf0]  ;;  %v3222_v7 = vld [vmem:[#allocation5 + $0x5c8] sm:$0xf]  ;;  %v3095_v11 = vor.u32 %v3739_v5, %v3094_v4  ;;  %v3613_v24 = vld [vmem:[#allocation5 + $0xec] sm:$0xf] }
  0x95   :  { %1624 = vmatpush.bf16.msra.mxu2 %v2951_v17  ;;  %v3771_v8 = vld [vmem:[#allocation5 + $0x5d4] sm:$0xf0]  ;;  %v2887_v14 = vor.u32 %v3687_v6, %v2886_v2  ;;  %v2870_v15 = vld [vmem:[#allocation5 + $0x308] sm:$0xf]  ;;  %v3601_v2 = vld [vmem:[#allocation5 + $0x8c] sm:$0xf] }
  0x96   :  { %1585 = vmatpush.bf16.msrb.mxu1 %v2519_v27  ;;  %1599 = vmatpush.bf16.msrb.mxu3 %v2647_v30  ;;  %v3223_v16 = vor.u32 %v3771_v8, %v3222_v7  ;;  %v3078_v17 = vld [vmem:[#allocation5 + $0x4a8] sm:$0xf]  ;;  %v3735_v18 = vld [vmem:[#allocation5 + $0x4b4] sm:$0xf0]  ;;  %v2600_v27 = vld [vmem:[#allocation5 + $0xf8] sm:$0xf0] }
  0x97   :  { %v3683_v19 = vld [vmem:[#allocation5 + $0x314] sm:$0xf0]  ;;  %v3206_v20 = vld [vmem:[#allocation5 + $0x5a8] sm:$0xf]  ;;  %v3079_v29 = vor.u32 %v3735_v18, %v3078_v17  ;;  %v3641_v30 = vld [vmem:[#allocation5 + $0x1cc] sm:$0xf]  ;;  %v2603_v36 = vor.u32 %v3613_v24, %v2600_v27 }
  0x98   :  { %1613 = vmatpush.bf16.msra.mxu0 %v2775_v40  ;;  %v3767_v21 = vld [vmem:[#allocation5 + $0x5b4] sm:$0xf0]  ;;  %v2871_v32 = vor.u32 %v3683_v19, %v2870_v15  ;;  %v3062_v34 = vld [vmem:[#allocation5 + $0x488] sm:$0xf]  ;;  %v2715_v43 = vor.u32 %v3641_v30, %v2712_v31  ;;  %v3629_v6 = vld [vmem:[#allocation5 + $0x16c] sm:$0xf] }
  0x99   :  { %1625 = vmatpush.bf16.msra.mxu2 %v2935_v33  ;;  %v3207_v33 = vor.u32 %v3767_v21, %v3206_v20  ;;  %v3731_v35 = vld [vmem:[#allocation5 + $0x494] sm:$0xf0]  ;;  %v3190_v39 = vld [vmem:[#allocation5 + $0x588] sm:$0xf]  ;;  %v2664_v7 = vld [vmem:[#allocation5 + $0x178] sm:$0xf0] }
  0x9a   :  { %1586 = vmatpush.bf16.msrb.mxu1 %v2503_v41  ;;  %1600 = vmatpush.bf16.msrb.mxu3 %v2631_v45  ;;  %v3763_v40 = vld [vmem:[#allocation5 + $0x594] sm:$0xf0]  ;;  %v3609_v41 = vld [vmem:[#allocation5 + $0xcc] sm:$0xf]  ;;  %v3063_v44 = vor.u32 %v3731_v35, %v3062_v34  ;;  %v3046_v48 = vld [vmem:[#allocation5 + $0x468] sm:$0xf] }
  0x9b   :  { %v3637_v45 = vld [vmem:[#allocation5 + $0x1ac] sm:$0xf]  ;;  %v3191_v47 = vor.u32 %v3763_v40, %v3190_v39  ;;  %v2587_v50 = vor.u32 %v3609_v41, %v2584_v42  ;;  %v3174_v51 = vld [vmem:[#allocation5 + $0x568] sm:$0xf]  ;;  %v3759_v52 = vld [vmem:[#allocation5 + $0x574] sm:$0xf0] }
  0x9c   :  { %1614 = vmatpush.bf16.msra.mxu0 %v2759_v56  ;;  %v2699_v55 = vor.u32 %v3637_v45, %v2696_v46  ;;  %v3175_v59 = vor.u32 %v3759_v52, %v3174_v51  ;;  %v3158_v0 = vld [vmem:[#allocation5 + $0x548] sm:$0xf]  ;;  %v3751_v13 = vld [vmem:[#allocation5 + $0x534] sm:$0xf0]  ;;  %v2536_v15 = vld [vmem:[#allocation5 + $0x78] sm:$0xf0] }
  0x9d   :  { %1626 = vmatpush.bf16.msra.mxu2 %v2919_v49  ;;  %v3727_v49 = vld [vmem:[#allocation5 + $0x474] sm:$0xf0]  ;;  %v3142_v12 = vld [vmem:[#allocation5 + $0x528] sm:$0xf]  ;;  %v3625_v18 = vld [vmem:[#allocation5 + $0x14c] sm:$0xf] }
  0x9e   :  { %1587 = vmatpush.bf16.msrb.mxu1 %v2487_v57  ;;  %1601 = vmatpush.bf16.msrb.mxu3 %v2615_v61  ;;  %v3047_v56 = vor.u32 %v3727_v49, %v3046_v48  ;;  %v3633_v57 = vld [vmem:[#allocation5 + $0x18c] sm:$0xf]  ;;  %v3030_v61 = vld [vmem:[#allocation5 + $0x448] sm:$0xf]  ;;  %v2648_v19 = vld [vmem:[#allocation5 + $0x158] sm:$0xf0]  ;;  %v3143_v21 = vor.u32 %v3751_v13, %v3142_v12 }
  0x9f   :  { %v2683_v4 = vor.u32 %v3633_v57, %v2680_v58  ;;  %v3593_v20 = vld [vmem:[#allocation5 + $0x4c] sm:$0xf]  ;;  %v2998_v24 = vld [vmem:[#allocation5 + $0x408] sm:$0xf]  ;;  %v3715_v27 = vld [vmem:[#allocation5 + $0x414] sm:$0xf0] }
  0xa0   :  { %1615 = vmatpush.bf16.msra.mxu0 %v2743_v9  ;;  %v3014_v9 = vld [vmem:[#allocation5 + $0x428] sm:$0xf]  ;;  %v3747_v30 = vld [vmem:[#allocation5 + $0x514] sm:$0xf0]  ;;  %v3677_v31 = vld [vmem:[#allocation5 + $0x2ec] sm:$0xf]  ;;  %v2999_v39 = vor.u32 %v3715_v27, %v2998_v24 }
  0xa1   :  { %1627 = vmatpush.bf16.msra.mxu2 %v2903_v1  ;;  %1588 = vmatmul.bf16.vlgmr.msrb.gmra.mxu1 %v4094_v37  ;;  %v3755_v1 = vld [vmem:[#allocation5 + $0x554] sm:$0xf0]  ;;  %v3709_v34 = vld [vmem:[#allocation5 + $0x3ec] sm:$0xf]  ;;  %v2984_v35 = vld [vmem:[#allocation5 + $0x3f8] sm:$0xf0] }
  0xa2   :  { %1636 = vmatpush.bf16.msra.mxu1 %v3111_v62  ;;  %1650 = vmatpush.bf16.msra.mxu3 %v3239_v3  ;;  %v3723_v62 = vld [vmem:[#allocation5 + $0x454] sm:$0xf0]  ;;  %v2552_v3 = vld [vmem:[#allocation5 + $0x98] sm:$0xf0]  ;;  %v3159_v8 = vor.u32 %v3755_v1, %v3158_v0  ;;  %v3621_v40 = vld [vmem:[#allocation5 + $0x12c] sm:$0xf]  ;;  %v2987_v46 = vor.u32 %v3709_v34, %v2984_v35 }
  0xa3   :  { %1602 = vmatmul.bf16.vlgmr.msrb.gmra.mxu3 %v4096_v38  ;;  %1616 = vmatmul.bf16.vlgmr.msra.gmra.mxu0 %v4088_v25  ;;  %v3031_v5 = vor.u32 %v3723_v62, %v3030_v61  ;;  %v2632_v41 = vld [vmem:[#allocation5 + $0x138] sm:$0xf0]  ;;  %v3589_v45 = vld [vmem:[#allocation5 + $0x2c] sm:$0xf] }
  0xa4   :  { %1671 = vmatpush.bf16.msrb.mxu0 %v3255_v10  ;;  %v3719_v10 = vld [vmem:[#allocation5 + $0x434] sm:$0xf0]  ;;  %v2840_v48 = vld [vmem:[#allocation5 + $0x2d8] sm:$0xf0]  ;;  %v2635_v52 = vor.u32 %v3621_v40, %v2632_v41  ;;  %v3669_v62 = vld [vmem:[#allocation5 + $0x2ac] sm:$0xf] }
  0xa5   :  { %1628 = vmatpush.bf16.msra.mxu2 %v2887_v14  ;;  %v3597_v14 = vld [vmem:[#allocation5 + $0x6c] sm:$0xf]  ;;  %v3015_v17 = vor.u32 %v3719_v10, %v3014_v9  ;;  %v2504_v49 = vld [vmem:[#allocation5 + $0x38] sm:$0xf0] }
  0xa6   :  { %1637 = vmatpush.bf16.msra.mxu1 %v3095_v11  ;;  %1651 = vmatpush.bf16.msra.mxu3 %v3223_v16  ;;  %v2555_v11 = vor.u32 %v3601_v2, %v2552_v3  ;;  %v2667_v16 = vor.u32 %v3629_v6, %v2664_v7  ;;  %v2968_v51 = vld [vmem:[#allocation5 + $0x3d8] sm:$0xf0]  ;;  %v2507_v58 = vor.u32 %v3589_v45, %v2504_v49  ;;  %v3701_v1 = vld [vmem:[#allocation5 + $0x3ac] sm:$0xf] }
  0xa7   :  { %v2616_v54 = vld [vmem:[#allocation5 + $0x118] sm:$0xf0]  ;;  %v3665_v12 = vld [vmem:[#allocation5 + $0x28c] sm:$0xf] }
  0xa8   :  { %1692 = vmatpush.bf16.msra.mxu0 %v2731_v28  ;;  %v3126_v28 = vld [vmem:[#allocation5 + $0x508] sm:$0xf]  ;;  %v3240_v57 = vld [vmem:[#allocation5 + $0x5f8] sm:$0xf0]  ;;  %v2619_v3 = vor.u32 %v3617_v53, %v2616_v54  ;;  %v3689_v45 = vld [vmem:[#allocation5 + $0x34c] sm:$0xf] }
  0xa9   :  { %1629 = vmatpush.bf16.msra.mxu2 %v2871_v32  ;;  %v2856_v32 = vld [vmem:[#allocation5 + $0x2f8] sm:$0xf0]  ;;  %v3127_v42 = vor.u32 %v3747_v30, %v3126_v28  ;;  %v3661_v28 = vld [vmem:[#allocation5 + $0x26c] sm:$0xf] }
  0xaa   :  { %1638 = vmatpush.bf16.msra.mxu1 %v3079_v29  ;;  %1652 = vmatpush.bf16.msra.mxu3 %v3207_v33  ;;  %v2539_v29 = vor.u32 %v3597_v14, %v2536_v15  ;;  %v2520_v33 = vld [vmem:[#allocation5 + $0x58] sm:$0xf0]  ;;  %v3697_v15 = vld [vmem:[#allocation5 + $0x38c] sm:$0xf] }
  0xab   :  { %v2488_v0 = vld [vmem:[#allocation5 + $0x18] sm:$0xf0] }
  0xac   :  { %1693 = vmatpush.bf16.msra.mxu0 %v2715_v43  ;;  %1630 = vmatmul.bf16.vlgmr.msra.gmra.mxu2 %v4090_v26  ;;  %v2859_v43 = vor.u32 %v3677_v31, %v2856_v32  ;;  %v2952_v2 = vld [vmem:[#allocation5 + $0x3b8] sm:$0xf0]  ;;  %v3693_v31 = vld [vmem:[#allocation5 + $0x36c] sm:$0xf] }
  0xad   :  { %1678 = vmatpush.bf16.msrb.mxu2 %v2603_v36  ;;  %v2651_v36 = vor.u32 %v3625_v18, %v2648_v19  ;;  %v3224_v9 = vld [vmem:[#allocation5 + $0x5d8] sm:$0xf0] }
  0xae   :  { %1639 = vmatpush.bf16.msra.mxu1 %v3063_v44  ;;  %1653 = vmatpush.bf16.msra.mxu3 %v3191_v47  ;;  %v2523_v44 = vor.u32 %v3593_v20, %v2520_v33  ;;  %v3673_v47 = vld [vmem:[#allocation5 + $0x2cc] sm:$0xf]  ;;  %v2808_v13 = vld [vmem:[#allocation5 + $0x298] sm:$0xf0] }
  0xaf   :  { %v3096_v18 = vld [vmem:[#allocation5 + $0x4d8] sm:$0xf0]  ;;  %v2811_v20 = vor.u32 %v3665_v12, %v2808_v13  ;;  %v3733_v33 = vld [vmem:[#allocation5 + $0x4ac] sm:$0xf] }
  0xb0   :  { %1694 = vmatpush.bf16.msra.mxu0 %v2699_v55  ;;  %v2843_v55 = vor.u32 %v3673_v47, %v2840_v48  ;;  %v3208_v24 = vld [vmem:[#allocation5 + $0x5b8] sm:$0xf0]  ;;  %v3729_v47 = vld [vmem:[#allocation5 + $0x48c] sm:$0xf] }
  0xb1   :  { %1679 = vmatpush.bf16.msrb.mxu2 %v2587_v50  ;;  %v3705_v50 = vld [vmem:[#allocation5 + $0x3cc] sm:$0xf]  ;;  %v2920_v32 = vld [vmem:[#allocation5 + $0x378] sm:$0xf0] }
  0xb2   :  { %1640 = vmatpush.bf16.msra.mxu1 %v3047_v56  ;;  %1654 = vmatpush.bf16.msra.mxu3 %v3175_v59  ;;  %v3773_v56 = vld [vmem:[#allocation5 + $0x5ec] sm:$0xf]  ;;  %v2971_v61 = vor.u32 %v3705_v50, %v2968_v51  ;;  %v3080_v34 = vld [vmem:[#allocation5 + $0x4b8] sm:$0xf0]  ;;  %v2923_v41 = vor.u32 %v3693_v31, %v2920_v32 }
  0xb3   :  { %3262 = vmatmul.msk.bf16.vlgmr.msrb.gmra.mxu0 %vm1380_vm0, %v4101_v60  ;;  %v3585_v59 = vld [vmem:[#allocation5 + $0xc] sm:$0xf]  ;;  %v3243_v6 = vor.u32 %v3773_v56, %v3240_v57  ;;  %v3192_v40 = vld [vmem:[#allocation5 + $0x598] sm:$0xf0] }
  0xb4   :  { %1695 = vmatpush.bf16.msra.mxu0 %v2683_v4  ;;  %v3741_v4 = vld [vmem:[#allocation5 + $0x4ec] sm:$0xf]  ;;  %v2491_v10 = vor.u32 %v3585_v59, %v2488_v0  ;;  %v2760_v53 = vld [vmem:[#allocation5 + $0x238] sm:$0xf0] }
  0xb5   :  { %1680 = vmatpush.bf16.msrb.mxu2 %v2571_v63  ;;  %v2824_v63 = vld [vmem:[#allocation5 + $0x2b8] sm:$0xf0]  ;;  %v3757_v50 = vld [vmem:[#allocation5 + $0x56c] sm:$0xf] }
  0xb6   :  { %1641 = vmatpush.bf16.msra.mxu1 %v3031_v5  ;;  %1655 = vmatpush.bf16.msra.mxu3 %v3159_v8  ;;  %v3112_v5 = vld [vmem:[#allocation5 + $0x4f8] sm:$0xf0]  ;;  %v2827_v7 = vor.u32 %v3669_v62, %v2824_v63  ;;  %v3769_v8 = vld [vmem:[#allocation5 + $0x5cc] sm:$0xf] }
  0xb7   :  { %v3115_v14 = vor.u32 %v3741_v4, %v3112_v5  ;;  %v3227_v19 = vor.u32 %v3769_v8, %v3224_v9  ;;  %v2888_v56 = vld [vmem:[#allocation5 + $0x338] sm:$0xf0]  ;;  %v3725_v57 = vld [vmem:[#allocation5 + $0x46c] sm:$0xf]  ;;  %v3322_v8 = vld [vmem:[#allocation7 + $0x70] sm:$0xf] }
  0xb8   :  { %1696 = vmatpush.bf16.msra.mxu0 %v2667_v16  ;;  %v2936_v16 = vld [vmem:[#allocation5 + $0x398] sm:$0xf0]  ;;  %v3753_v62 = vld [vmem:[#allocation5 + $0x54c] sm:$0xf]  ;;  %v3795_v9 = vld [vmem:[#allocation7 + $0x74] sm:$0xf0] }
  0xb9   :  { %1681 = vmatpush.bf16.msrb.mxu2 %v2555_v11  ;;  %v2955_v11 = vor.u32 %v3701_v1, %v2952_v2  ;;  %v2939_v27 = vor.u32 %v3697_v15, %v2936_v16  ;;  %v3160_v63 = vld [vmem:[#allocation5 + $0x558] sm:$0xf0]  ;;  %v3649_v1 = vld [vmem:[#allocation5 + $0x20c] sm:$0xf]  ;;  %v4128_v15 = vld [vmem:[#allocation10] sm:$0x77] }
  0xba   :  { %1642 = vmatpush.bf16.msra.mxu1 %v3015_v17  ;;  %1656 = vmatpush.bf16.msra.mxu3 %v3143_v21  ;;  %v3737_v17 = vld [vmem:[#allocation5 + $0x4cc] sm:$0xf]  ;;  %v2744_v2 = vld [vmem:[#allocation5 + $0x218] sm:$0xf0] }
  0xbb   :  { %v3765_v21 = vld [vmem:[#allocation5 + $0x5ac] sm:$0xf]  ;;  %v3099_v30 = vor.u32 %v3737_v17, %v3096_v18  ;;  %v3144_v13 = vld [vmem:[#allocation5 + $0x538] sm:$0xf0]  ;;  %v3323_v18 = vor.u32 %v3795_v9, %v3322_v8  ;;  %v3785_v8 = vld [vmem:[#allocation7 + $0x24] sm:$0xf0] }
  0xbc   :  { %1697 = vmatpush.bf16.msra.mxu0 %v2651_v36  ;;  %v3211_v35 = vor.u32 %v3765_v21, %v3208_v24  ;;  %v3721_v4 = vld [vmem:[#allocation5 + $0x44c] sm:$0xf]  ;;  %v3793_v21 = vld [vmem:[#allocation7 + $0x64] sm:$0xf0] }
  0xbd   :  { %1682 = vmatpush.bf16.msrb.mxu2 %v2539_v29  ;;  %v2792_v29 = vld [vmem:[#allocation5 + $0x278] sm:$0xf0]  ;;  %v3681_v5 = vld [vmem:[#allocation5 + $0x30c] sm:$0xf] }
  0xbe   :  { %1643 = vmatpush.bf16.msra.mxu1 %v2999_v39  ;;  %1657 = vmatpush.bf16.msra.mxu3 %v3127_v42  ;;  %v2795_v36 = vor.u32 %v3661_v28, %v2792_v29  ;;  %v3761_v39 = vld [vmem:[#allocation5 + $0x58c] sm:$0xf]  ;;  %v3128_v28 = vld [vmem:[#allocation5 + $0x518] sm:$0xf0]  ;;  %v388_v29 = vperm.slane %v4128_v15, 0 }
  0xbf   :  { %v3657_v42 = vld [vmem:[#allocation5 + $0x24c] sm:$0xf]  ;;  %v3195_v48 = vor.u32 %v3761_v39, %v3192_v40  ;;  %v3000_v40 = vld [vmem:[#allocation5 + $0x418] sm:$0xf0] }
  0xc0   :  { %1698 = vmatpush.bf16.msra.mxu0 %v2635_v52  ;;  %v3653_v52 = vld [vmem:[#allocation5 + $0x22c] sm:$0xf] }
  0xc1   :  { %1683 = vmatpush.bf16.msrb.mxu2 %v2523_v44  ;;  %1644 = vmatmul.bf16.vlgmr.msra.gmra.mxu1 %v4105_v22  ;;  %v3083_v44 = vor.u32 %v3733_v33, %v3080_v34  ;;  %v3749_v12 = vld [vmem:[#allocation5 + $0x52c] sm:$0xf]  ;;  %v3386_v34 = vld [vmem:[#allocation7 + $0xf0] sm:$0xf] }
  0xc2   :  { %1706 = vmatpush.bf16.msrb.mxu1 %v2859_v43  ;;  %1720 = vmatpush.bf16.msrb.mxu3 %v2987_v46  ;;  %v2776_v43 = vld [vmem:[#allocation5 + $0x258] sm:$0xf0]  ;;  %v3717_v17 = vld [vmem:[#allocation5 + $0x42c] sm:$0xf]  ;;  %v3147_v24 = vor.u32 %v3749_v12, %v3144_v13  ;;  %v3346_v12 = vld [vmem:[#allocation7 + $0xa0] sm:$0xf] }
  0xc3   :  { %1658 = vmatmul.bf16.vlgmr.msra.gmra.mxu3 %v4107_v23  ;;  %v2904_v46 = vld [vmem:[#allocation5 + $0x358] sm:$0xf0]  ;;  %v2779_v49 = vor.u32 %v3657_v42, %v2776_v43  ;;  %v3713_v32 = vld [vmem:[#allocation5 + $0x40c] sm:$0xf]  ;;  %v3791_v42 = vld [vmem:[#allocation7 + $0x54] sm:$0xf0] }
  0xc4   :  { %1699 = vmatpush.bf16.msra.mxu0 %v2619_v3  ;;  %v2907_v51 = vor.u32 %v3689_v45, %v2904_v46  ;;  %v3777_v45 = vld [vmem:[#allocation5 + $0x60c] sm:$0xf]  ;;  %v3256_v46 = vld [vmem:[#allocation5 + $0x618] sm:$0xf0]  ;;  %v3801_v13 = vld [vmem:[#allocation7 + $0xa4] sm:$0xf0] }
  0xc5   :  { %1684 = vmatpush.bf16.msrb.mxu2 %v2507_v58  ;;  %v3048_v58 = vld [vmem:[#allocation5 + $0x478] sm:$0xf0] }
  0xc6   :  { %1707 = vmatpush.bf16.msrb.mxu1 %v2843_v55  ;;  %1721 = vmatpush.bf16.msrb.mxu3 %v2971_v61  ;;  %v3685_v55 = vld [vmem:[#allocation5 + $0x32c] sm:$0xf]  ;;  %v2763_v61 = vor.u32 %v3653_v52, %v2760_v53  ;;  %v3051_v3 = vor.u32 %v3725_v57, %v3048_v58  ;;  %v3370_v53 = vld [vmem:[#allocation7 + $0xd0] sm:$0xf]  ;;  %v3362_v58 = vld [vmem:[#allocation7 + $0xc0] sm:$0xf] }
  0xc7   :  { %1700 = vmatmul.bf16.vlgmr.msra.gmra.mxu0 %v4096_v38  ;;  %v3064_v38 = vld [vmem:[#allocation5 + $0x498] sm:$0xf0]  ;;  %v2891_v0 = vor.u32 %v3685_v55, %v2888_v56 }
  0xc8   :  { %1748 = vmatpush.bf16.msrb.mxu0 %v3243_v6  ;;  %v3067_v54 = vor.u32 %v3729_v47, %v3064_v38  ;;  %v2872_v6 = vld [vmem:[#allocation5 + $0x318] sm:$0xf0]  ;;  %v396_v47 = vperm.slane %v388_v29, 0  ;;  %v3003_v38 = vor.u32 %v3713_v32, %v3000_v40  ;;  %v3781_v29 = vld [vmem:[#allocation7 + $0x4] sm:$0xf0] }
  0xc9   :  { %1685 = vmatpush.bf16.msrb.mxu2 %v2491_v10  ;;  %v3163_v10 = vor.u32 %v3753_v62, %v3160_v63  ;;  %v3787_v62 = vld [vmem:[#allocation7 + $0x34] sm:$0xf0]  ;;  %v3794_v32 = vld [vmem:[#allocation7 + $0x74] sm:$0xf] }
  0xca   :  { %1708 = vmatpush.bf16.msrb.mxu1 %v2827_v7  ;;  %1722 = vmatpush.bf16.msrb.mxu3 %v2955_v11  ;;  %v3032_v7 = vld [vmem:[#allocation5 + $0x458] sm:$0xf0]  ;;  %v2747_v11 = vor.u32 %v3649_v1, %v2744_v2 }
  0xcb   :  { %v3035_v16 = vor.u32 %v3721_v4, %v3032_v7  ;;  %v3282_v7 = vld [vmem:[#allocation7 + $0x20] sm:$0xf] }
  0xcc   :  { %1749 = vmatpush.bf16.msrb.mxu0 %v3227_v19  ;;  %1686 = vmatmul.bf16.vlgmr.msrb.gmra.mxu2 %v4094_v37  ;;  %v3176_v37 = vld [vmem:[#allocation5 + $0x578] sm:$0xf0] }
  0xcd   :  { %1734 = vmatpush.bf16.msra.mxu2 %v3115_v14  ;;  %v3179_v59 = vor.u32 %v3757_v50, %v3176_v37  ;;  %v2875_v14 = vor.u32 %v3681_v5, %v2872_v6  ;;  %v3016_v19 = vld [vmem:[#allocation5 + $0x438] sm:$0xf0]  ;;  %v3809_v50 = vld [vmem:[#allocation7 + $0xe4] sm:$0xf0]  ;;  %v3259_v37 = vor.u32 %v3777_v45, %v3256_v46  ;;  %v3354_v5 = vld [vmem:[#allocation7 + $0xb0] sm:$0xf] }
  0xce   :  { %1709 = vmatpush.bf16.msrb.mxu1 %v2811_v20  ;;  %1723 = vmatpush.bf16.msrb.mxu3 %v2939_v27  ;;  %v3314_v20 = vld [vmem:[#allocation7 + $0x60] sm:$0xf]  ;;  %v3745_v27 = vld [vmem:[#allocation5 + $0x50c] sm:$0xf]  ;;  %v3019_v31 = vor.u32 %v3717_v17, %v3016_v19  ;;  %v1407_v39 = vpop.f32.mrf.mxu1  ;;  %v3803_v6 = vld [vmem:[#allocation7 + $0xb4] sm:$0xf0] }
  0xcf   :  { %v3315_v33 = vor.u32 %v3793_v21, %v3314_v20  ;;  %v3131_v43 = vor.u32 %v3745_v27, %v3128_v28  ;;  %v3347_v21 = vor.u32 %v3801_v13, %v3346_v12  ;;  %v3266_v28 = vld [vmem:[#allocation7] sm:$0xf]  ;;  %v3804_v12 = vld [vmem:[#allocation7 + $0xc4] sm:$0xf]  ;;  %v3364_v13 = vld [vmem:[#allocation7 + $0xc8] sm:$0xf0] }
  0xd0   :  { %1750 = vmatpush.bf16.msrb.mxu0 %v3211_v35  ;;  %v3811_v35 = vld [vmem:[#allocation7 + $0xf4] sm:$0xf0] }
  0xd1   :  { %1735 = vmatpush.bf16.msra.mxu2 %v3099_v30  ;;  %v4131_v30 = vpop.f32.mrf.mxu2 }
  0xd2   :  { %1710 = vmatpush.bf16.msrb.mxu1 %v2795_v36  ;;  %1724 = vmatpush.bf16.msrb.mxu3 %v2923_v41  ;;  %v1393_v36 = vpop.f32.mrf.mxu0  ;;  %v3306_v41 = vld [vmem:[#allocation7 + $0x50] sm:$0xf] }
  0xd3   :  { %v1394_v55 = vadd.f32 %v1393_v36, %v396_v47  ;;  %v3799_v36 = vld [vmem:[#allocation7 + $0x94] sm:$0xf0] }
  0xd4   :  { %1751 = vmatpush.bf16.msrb.mxu0 %v3195_v48  ;;  %v3307_v48 = vor.u32 %v3791_v42, %v3306_v41  ;;  %v3330_v41 = vld [vmem:[#allocation7 + $0x80] sm:$0xf]  ;;  %v3797_v42 = vld [vmem:[#allocation7 + $0x84] sm:$0xf0] }
  0xd5   :  { %1736 = vmatpush.bf16.msra.mxu2 %v3083_v44  ;;  %v3387_v44 = vor.u32 %v3811_v35, %v3386_v34  ;;  %v3267_v34 = vor.u32 %v3781_v29, %v3266_v28  ;;  %v3338_v35 = vld [vmem:[#allocation7 + $0x90] sm:$0xf] }
  0xd6   :  { %1711 = vmatpush.bf16.msrb.mxu1 %v2779_v49  ;;  %1725 = vmatpush.bf16.msrb.mxu3 %v2907_v51  ;;  %v3378_v49 = vld [vmem:[#allocation7 + $0xe0] sm:$0xf]  ;;  %v3789_v51 = vld [vmem:[#allocation7 + $0x44] sm:$0xf0]  ;;  %v1409_v1 = vpop.f32.mrf.mxu1  ;;  %v3339_v40 = vor.u32 %v3799_v36, %v3338_v35  ;;  %v3800_v36 = vld [vmem:[#allocation7 + $0xa4] sm:$0xf] }
  0xd7   :  { %v3379_v52 = vor.u32 %v3809_v50, %v3378_v49  ;;  %v3331_v50 = vor.u32 %v3797_v42, %v3330_v41  ;;  %v3782_v41 = vld [vmem:[#allocation7 + $0x14] sm:$0xf]  ;;  %v3276_v42 = vld [vmem:[#allocation7 + $0x18] sm:$0xf0] }
  0xd8   :  { %1752 = vmatpush.bf16.msrb.mxu0 %v3179_v59  ;;  %v3805_v59 = vld [vmem:[#allocation7 + $0xc4] sm:$0xf0] }
  0xd9   :  { %1737 = vmatpush.bf16.msra.mxu2 %v3067_v54  ;;  %v3807_v54 = vld [vmem:[#allocation7 + $0xd4] sm:$0xf0]  ;;  %v1423_v63 = vpop.f32.mrf.mxu2  ;;  %v3363_v2 = vor.u32 %v3805_v59, %v3362_v58  ;;  %v389_v58 = vperm.slane %v4128_v15, 4  ;;  %v3808_v59 = vld [vmem:[#allocation7 + $0xe4] sm:$0xf] }
  0xda   :  { %1712 = vmatpush.bf16.msrb.mxu1 %v2763_v61  ;;  %1726 = vmatpush.bf16.msrb.mxu3 %v2891_v0  ;;  %v3371_v57 = vor.u32 %v3807_v54, %v3370_v53  ;;  %v3290_v61 = vld [vmem:[#allocation7 + $0x30] sm:$0xf]  ;;  %v1395_v0 = vpop.f32.mrf.mxu0 }
  0xdb   :  { %v3291_v4 = vor.u32 %v3787_v62, %v3290_v61  ;;  %v1396_v9 = vadd.f32 %v1395_v0, %v396_v47  ;;  %v3792_v47 = vld [vmem:[#allocation7 + $0x64] sm:$0xf] }
  0xdc   :  { %1753 = vmatpush.bf16.msrb.mxu0 %v3163_v10  ;;  %v3355_v10 = vor.u32 %v3803_v6, %v3354_v5  ;;  %v397_v5 = vperm.slane %v389_v58, 0  ;;  %v3823_v58 = vld [vmem:[#allocation7 + $0x154] sm:$0xf0] }
  0xdd   :  { %1738 = vmatpush.bf16.msra.mxu2 %v3051_v3  ;;  %v1408_v3 = vadd.f32 %v1407_v39, %v1394_v55 }
  0xde   :  { %1713 = vmatpush.bf16.msrb.mxu1 %v2747_v11  ;;  %1727 = vmatpush.bf16.msrb.mxu3 %v2875_v14  ;;  %v3283_v11 = vor.u32 %v3785_v8, %v3282_v7  ;;  %v3274_v14 = vld [vmem:[#allocation7 + $0x10] sm:$0xf]  ;;  %v3786_v8 = vld [vmem:[#allocation7 + $0x34] sm:$0xf] }
  0xe0   :  { %1754 = vmatpush.bf16.msrb.mxu0 %v3147_v24 }
  0xe1   :  { %1739 = vmatpush.bf16.msra.mxu2 %v3035_v16  ;;  %1714 = vmatmul.bf16.vlgmr.msrb.gmra.mxu1 %v4088_v25  ;;  %v3298_v25 = vld [vmem:[#allocation7 + $0x40] sm:$0xf]  ;;  %v1410_v16 = vadd.f32 %v1409_v1, %v1396_v9  ;;  %v3788_v1 = vld [vmem:[#allocation7 + $0x44] sm:$0xf]  ;;  %v3806_v9 = vld [vmem:[#allocation7 + $0xd4] sm:$0xf] }
  0xe2   :  { %2178 = vmatpush.bf16.msra.mxu3 %v3323_v18  ;;  %2192 = vmatpush.bf16.msra.mxu1 %v3387_v44  ;;  %v3299_v56 = vor.u32 %v3789_v51, %v3298_v25  ;;  %v3810_v25 = vld [vmem:[#allocation7 + $0xf4] sm:$0xf]  ;;  %v3388_v51 = vld [vmem:[#allocation7 + $0xf8] sm:$0xf0] }
  0xe3   :  { %1728 = vmatmul.bf16.vlgmr.msrb.gmra.mxu3 %v4090_v26  ;;  %v1435_v26 = vpop.f32.mrf.mxu3  ;;  %v3391_v53 = vor.u32 %v3810_v25, %v3388_v51  ;;  %v3268_v25 = vld [vmem:[#allocation7 + $0x8] sm:$0xf0] }
  0xe4   :  { %1755 = vmatpush.bf16.msrb.mxu0 %v3131_v43 }
  0xe5   :  { %1740 = vmatpush.bf16.msra.mxu2 %v3019_v31  ;;  %v1424_v31 = vadd.f32 %v1423_v63, %v1410_v16  ;;  %v3367_v16 = vor.u32 %v3804_v12, %v3364_v13 }
  0xe6   :  { %2179 = vmatpush.bf16.msra.mxu3 %v3315_v33  ;;  %2193 = vmatpush.bf16.msra.mxu1 %v3379_v52  ;;  %v3324_v33 = vld [vmem:[#allocation7 + $0x78] sm:$0xf0] }
  0xe7   :  { %1756 = vmatmul.bf16.vlgmr.msrb.gmra.mxu0 %v4107_v23  ;;  %v1422_v23 = vadd.f32 %v4131_v30, %v1408_v3  ;;  %v1477_v18 = vpop.f32.mrf.mxu2  ;;  %v3327_v39 = vor.u32 %v3794_v32, %v3324_v33  ;;  %v3442_v33 = vld [vmem:[#allocation7 + $0x160] sm:$0xf] }
  0xe9   :  { %1741 = vmatpush.bf16.msra.mxu2 %v3003_v38  ;;  %v1463_v20 = vpop.f32.mrf.mxu1  ;;  %v1436_v24 = vadd.f32 %v1435_v26, %v1422_v23  ;;  %v3316_v38 = vld [vmem:[#allocation7 + $0x68] sm:$0xf0]  ;;  %v3790_v26 = vld [vmem:[#allocation7 + $0x54] sm:$0xf]  ;;  %v3292_v23 = vld [vmem:[#allocation7 + $0x38] sm:$0xf0] }
  0xea   :  { %2180 = vmatpush.bf16.msra.mxu3 %v3307_v48  ;;  %2194 = vmatpush.bf16.msra.mxu1 %v3371_v57  ;;  %v1449_v19 = vpop.f32.mrf.mxu0  ;;  %v3319_v52 = vor.u32 %v3792_v47, %v3316_v38 }
  0xeb   :  { %v1437_v17 = vpop.f32.mrf.mxu3  ;;  %v1450_v30 = vadd.f32 %v1449_v19, %v1436_v24  ;;  %v3356_v19 = vld [vmem:[#allocation7 + $0xb8] sm:$0xf0]  ;;  %v3784_v24 = vld [vmem:[#allocation7 + $0x24] sm:$0xf] }
  0xec   :  { %1742 = vmatmul.bf16.vlgmr.msra.gmra.mxu2 %v4105_v22  ;;  %v3783_v22 = vld [vmem:[#allocation7 + $0x14] sm:$0xf0]  ;;  %v1438_v43 = vadd.f32 %v1437_v17, %v1424_v31  ;;  %v3802_v17 = vld [vmem:[#allocation7 + $0xb4] sm:$0xf] }
  0xed   :  { %1769 = vmatpush.bf16.msrb.mxu2 %v3259_v37  ;;  %v3275_v27 = vor.u32 %v3783_v22, %v3274_v14  ;;  %v1464_v44 = vadd.f32 %v1463_v20, %v1450_v30  ;;  %v3450_v20 = vld [vmem:[#allocation7 + $0x170] sm:$0xf]  ;;  %v3359_v32 = vor.u32 %v3802_v17, %v3356_v19  ;;  %v3815_v19 = vld [vmem:[#allocation7 + $0x114] sm:$0xf0] }
  0xee   :  { %2181 = vmatpush.bf16.msra.mxu3 %v3299_v56  ;;  %2195 = vmatpush.bf16.msra.mxu1 %v3363_v2  ;;  %v3308_v56 = vld [vmem:[#allocation7 + $0x58] sm:$0xf0]  ;;  %v3300_v2 = vld [vmem:[#allocation7 + $0x48] sm:$0xf0] }
  0xef   :  { %v1479_v45 = vpop.f32.mrf.mxu2  ;;  %v1478_v54 = vadd.f32 %v1477_v18, %v1464_v44  ;;  %v3311_v61 = vor.u32 %v3790_v26, %v3308_v56  ;;  %v3303_v7 = vor.u32 %v3788_v1, %v3300_v2  ;;  %v3295_v18 = vor.u32 %v3786_v8, %v3292_v23  ;;  %v3796_v26 = vld [vmem:[#allocation7 + $0x84] sm:$0xf]  ;;  %v3332_v56 = vld [vmem:[#allocation7 + $0x88] sm:$0xf0]  ;;  %v3426_v1 = vld [vmem:[#allocation7 + $0x140] sm:$0xf] }
  0xf0   :  { %v3821_v2 = vld [vmem:[#allocation7 + $0x144] sm:$0xf0]  ;;  %v3418_v8 = vld [vmem:[#allocation7 + $0x130] sm:$0xf]  ;;  %v3410_v23 = vld [vmem:[#allocation7 + $0x120] sm:$0xf] }
  0xf1   :  { %v1465_v49 = vpop.f32.mrf.mxu1  ;;  %v1776_v63 = vmax.f32 %v1478_v54, 0.0 }
  0xf2   :  { %2182 = vmatpush.bf16.msra.mxu3 %v3291_v4  ;;  %2196 = vmatpush.bf16.msra.mxu1 %v3355_v10  ;;  %v1451_v48 = vpop.f32.mrf.mxu0  ;;  %v3372_v10 = vld [vmem:[#allocation7 + $0xd8] sm:$0xf0] }
  0xf3   :  { %v1491_v46 = vpop.f32.mrf.mxu3  ;;  %v1452_v37 = vadd.f32 %v1451_v48, %v1438_v43  ;;  %v3279_v48 = vor.u32 %v3782_v41, %v3276_v42 }
  0xf4   :  { %v1492_v22 = vadd.f32 %v1491_v46, %v397_v5 }
  0xf5   :  { %v1466_v55 = vadd.f32 %v1465_v49, %v1452_v37  ;;  %v3798_v49 = vld [vmem:[#allocation7 + $0x94] sm:$0xf]  ;;  %v3780_v37 = vld [vmem:[#allocation7 + $0x4] sm:$0xf] }
  0xf6   :  { %2183 = vmatpush.bf16.msra.mxu3 %v3283_v11  ;;  %2197 = vmatpush.bf16.msra.mxu1 %v3347_v21  ;;  %v3375_v11 = vor.u32 %v3806_v9, %v3372_v10  ;;  %v3827_v21 = vld [vmem:[#allocation7 + $0x174] sm:$0xf0] }
  0xf7   :  { %v1480_v57 = vadd.f32 %v1479_v45, %v1466_v55  ;;  %v1505_v3 = vpop.f32.mrf.mxu2  ;;  %v3451_v28 = vor.u32 %v3827_v21, %v3450_v20  ;;  %v3271_v55 = vor.u32 %v3780_v37, %v3268_v25  ;;  %v3819_v9 = vld [vmem:[#allocation7 + $0x134] sm:$0xf0]  ;;  %v3420_v37 = vld [vmem:[#allocation7 + $0x138] sm:$0xf0]  ;;  %v3514_v25 = vld [vmem:[#allocation7 + $0x1f0] sm:$0xf] }
  0xf8   :  { %v1506_v31 = vadd.f32 %v1505_v3, %v1492_v22  ;;  %v3419_v10 = vor.u32 %v3819_v9, %v3418_v8 }
  0xf9   :  { %v1780_v0 = vmax.f32 %v1480_v57, 0.0  ;;  %2206 = vmatpush.bf16.msra.mxu2 %v3451_v28  ;;  %v3434_v57 = vld [vmem:[#allocation7 + $0x150] sm:$0xf]  ;;  %v3813_v28 = vld [vmem:[#allocation7 + $0x104] sm:$0xf0] }
  0xfa   :  { %2184 = vmatpush.bf16.msra.mxu3 %v3275_v27  ;;  %2198 = vmatpush.bf16.msra.mxu1 %v3339_v40  ;;  %v3284_v27 = vld [vmem:[#allocation7 + $0x28] sm:$0xf0]  ;;  %v3825_v40 = vld [vmem:[#allocation7 + $0x164] sm:$0xf0] }
  0xfb   :  { %v4141_v4 = vpack.c.bf16 %v1780_v0, %v1776_v63  ;;  %v1493_v6 = vpop.f32.mrf.mxu3  ;;  %v3287_v35 = vor.u32 %v3784_v24, %v3284_v27  ;;  %v3443_v43 = vor.u32 %v3825_v40, %v3442_v33  ;;  %v3335_v0 = vor.u32 %v3796_v26, %v3332_v56  ;;  %v3394_v27 = vld [vmem:[#allocation7 + $0x100] sm:$0xf]  ;;  %v3444_v33 = vld [vmem:[#allocation7 + $0x168] sm:$0xf0]  ;;  %v3816_v26 = vld [vmem:[#allocation7 + $0x124] sm:$0xf] }
  0xfc   :  { %3263 = vmatmul.msk.bf16.vlgmr.msrb.gmra.mxu2 %vm1380_vm0, %v4101_v60  ;;  %v3380_v60 = vld [vmem:[#allocation7 + $0xe8] sm:$0xf0]  ;;  %v1519_v14 = vpop.f32.mrf.mxu0  ;;  %v1494_v30 = vadd.f32 %v1493_v6, %v397_v5  ;;  %v3427_v5 = vor.u32 %v3821_v2, %v3426_v1  ;;  %v3839_v1 = vld [vmem:[#allocation7 + $0x1d4] sm:$0xf0] }
  0xfd   :  { %v3383_v62 = vor.u32 %v3808_v59, %v3380_v60  ;;  %v1520_v46 = vadd.f32 %v1519_v14, %v1506_v31  ;;  %2207 = vmatpush.bf16.msra.mxu2 %v3443_v43  ;;  %v3395_v31 = vor.u32 %v3813_v28, %v3394_v27  ;;  %v3822_v43 = vld [vmem:[#allocation7 + $0x154] sm:$0xf]  ;;  %v3412_v56 = vld [vmem:[#allocation7 + $0x128] sm:$0xf0] }
  0xfe   :  { %2185 = vmatpush.bf16.msra.mxu3 %v3267_v34  ;;  %2199 = vmatpush.bf16.msra.mxu1 %v3331_v50  ;;  %v1533_v29 = vpop.f32.mrf.mxu1  ;;  %v3340_v50 = vld [vmem:[#allocation7 + $0x98] sm:$0xf0] }
  0xff   :  { %v1507_v34 = vpop.f32.mrf.mxu2  ;;  %v1534_v51 = vadd.f32 %v1533_v29, %v1520_v46  ;;  %v3826_v29 = vld [vmem:[#allocation7 + $0x174] sm:$0xf]  ;;  %v3820_v46 = vld [vmem:[#allocation7 + $0x144] sm:$0xf] }
 0x100   :  { %v1508_v47 = vadd.f32 %v1507_v34, %v1494_v30  ;;  %v3452_v30 = vld [vmem:[#allocation7 + $0x178] sm:$0xf0] }
 0x101   :  { %2186 = vmatmul.bf16.vlgmr.msra.gmra.mxu3 %v4141_v4  ;;  %v3455_v34 = vor.u32 %v3826_v29, %v3452_v30  ;;  %v3835_v30 = vld [vmem:[#allocation7 + $0x1b4] sm:$0xf0] }
 0x102   :  { %2234 = vmatpush.bf16.msrb.mxu3 %v3327_v39  ;;  %2248 = vmatpush.bf16.msrb.mxu1 %v3391_v53  ;;  %v3348_v39 = vld [vmem:[#allocation7 + $0xa8] sm:$0xf0]  ;;  %v3343_v53 = vor.u32 %v3798_v49, %v3340_v50  ;;  %v3818_v50 = vld [vmem:[#allocation7 + $0x134] sm:$0xf] }
 0x103   :  { %v3351_v38 = vor.u32 %v3800_v36, %v3348_v39  ;;  %v4145_v39 = vld [vmem:[#allocation10 + $0x8] sm:$0x77] }
 0x104   :  { %v1521_v45 = vpop.f32.mrf.mxu0  ;;  %v390_v41 = vperm.slane %v4145_v39, 0 }
 0x106   :  { %2235 = vmatpush.bf16.msrb.mxu3 %v3319_v52  ;;  %2249 = vmatpush.bf16.msrb.mxu1 %v3383_v62  ;;  %v1547_v44 = vpop.f32.mrf.mxu3  ;;  %v1522_v52 = vadd.f32 %v1521_v45, %v1508_v47  ;;  %v1535_v54 = vpop.f32.mrf.mxu1  ;;  %v3428_v47 = vld [vmem:[#allocation7 + $0x148] sm:$0xf0] }
 0x107   :  { %v1548_v62 = vadd.f32 %v1547_v44, %v1534_v51  ;;  %v3436_v44 = vld [vmem:[#allocation7 + $0x158] sm:$0xf0]  ;;  %v3431_v49 = vor.u32 %v3820_v46, %v3428_v47  ;;  %v3466_v46 = vld [vmem:[#allocation7 + $0x190] sm:$0xf]  ;;  %v3831_v47 = vld [vmem:[#allocation7 + $0x194] sm:$0xf0] }
 0x108   :  { %v1536_v63 = vadd.f32 %v1535_v54, %v1522_v52  ;;  %v3439_v45 = vor.u32 %v3822_v43, %v3436_v44  ;;  %v3843_v52 = vld [vmem:[#allocation7 + $0x1f4] sm:$0xf0]  ;;  %v3423_v54 = vor.u32 %v3818_v50, %v3420_v37 }
 0x10a   :  { %2236 = vmatpush.bf16.msrb.mxu3 %v3311_v61  ;;  %2250 = vmatpush.bf16.msrb.mxu1 %v3375_v11  ;;  %v3435_v61 = vor.u32 %v3823_v58, %v3434_v57  ;;  %v3817_v11 = vld [vmem:[#allocation7 + $0x124] sm:$0xf0]  ;;  %v3506_v57 = vld [vmem:[#allocation7 + $0x1e0] sm:$0xf] }
 0x10b   :  { %v3841_v58 = vld [vmem:[#allocation7 + $0x1e4] sm:$0xf0] }
 0x10c   :  { %v1575_v60 = vpop.f32.mrf.mxu0  ;;  %2208 = vmatpush.bf16.msra.mxu2 %v3435_v61  ;;  %v3507_v61 = vor.u32 %v3841_v58, %v3506_v57 }
 0x10e   :  { %2237 = vmatpush.bf16.msrb.mxu3 %v3303_v7  ;;  %2251 = vmatpush.bf16.msrb.mxu1 %v3367_v16  ;;  %v1549_v3 = vpop.f32.mrf.mxu3  ;;  %v3411_v16 = vor.u32 %v3817_v11, %v3410_v23  ;;  %v3812_v23 = vld [vmem:[#allocation7 + $0x104] sm:$0xf]  ;;  %v3396_v11 = vld [vmem:[#allocation7 + $0x108] sm:$0xf0] }
 0x10f   :  { %v1561_v59 = vpop.f32.mrf.mxu2  ;;  %v1550_v7 = vadd.f32 %v1549_v3, %v1536_v63  ;;  %v3415_v3 = vor.u32 %v3816_v26, %v3412_v56  ;;  %v3838_v26 = vld [vmem:[#allocation7 + $0x1d4] sm:$0xf]  ;;  %v3500_v56 = vld [vmem:[#allocation7 + $0x1d8] sm:$0xf0] }
 0x110   :  { %v1562_v6 = vadd.f32 %v1561_v59, %v1548_v62  ;;  %2209 = vmatpush.bf16.msra.mxu2 %v3427_v5  ;;  %v3814_v5 = vld [vmem:[#allocation7 + $0x114] sm:$0xf] }
 0x112   :  { %2238 = vmatpush.bf16.msrb.mxu3 %v3295_v18  ;;  %2252 = vmatpush.bf16.msrb.mxu1 %v3359_v32  ;;  %v1576_v14 = vadd.f32 %v1575_v60, %v1562_v6  ;;  %v3402_v18 = vld [vmem:[#allocation7 + $0x110] sm:$0xf]  ;;  %v3824_v32 = vld [vmem:[#allocation7 + $0x164] sm:$0xf]  ;;  %v3404_v6 = vld [vmem:[#allocation7 + $0x118] sm:$0xf0] }
 0x113   :  { %v3447_v36 = vor.u32 %v3824_v32, %v3444_v33 }
 0x114   :  { %v1577_v13 = vpop.f32.mrf.mxu0  ;;  %2210 = vmatpush.bf16.msra.mxu2 %v3419_v10  ;;  %v1777_v20 = vmax.f32 %v1576_v14, 0.0  ;;  %v3407_v10 = vor.u32 %v3814_v5, %v3404_v6 }
 0x116   :  { %2239 = vmatpush.bf16.msrb.mxu3 %v3287_v35  ;;  %2253 = vmatpush.bf16.msrb.mxu1 %v3351_v38  ;;  %v398_v38 = vperm.slane %v390_v41, 0 }
 0x117   :  { %v1563_v12 = vpop.f32.mrf.mxu2 }
 0x118   :  { %v1564_v22 = vadd.f32 %v1563_v12, %v1550_v7  ;;  %2211 = vmatpush.bf16.msra.mxu2 %v3411_v16  ;;  %v3490_v12 = vld [vmem:[#allocation7 + $0x1c0] sm:$0xf] }
 0x11a   :  { %2240 = vmatpush.bf16.msrb.mxu3 %v3279_v48  ;;  %2254 = vmatpush.bf16.msrb.mxu1 %v3343_v53  ;;  %v1578_v17 = vadd.f32 %v1577_v13, %v1564_v22  ;;  %v3837_v13 = vld [vmem:[#allocation7 + $0x1c4] sm:$0xf0] }
 0x11b   :  { %v3491_v16 = vor.u32 %v3837_v13, %v3490_v12  ;;  %v3468_v12 = vld [vmem:[#allocation7 + $0x198] sm:$0xf0] }
 0x11c   :  { %v1781_v21 = vmax.f32 %v1578_v17, 0.0 }
 0x11e   :  { %2241 = vmatpush.bf16.msrb.mxu3 %v3271_v55  ;;  %2255 = vmatpush.bf16.msrb.mxu1 %v3335_v0  ;;  %v1785_v24 = vpack.c.bf16 %v1781_v21, %v1777_v20  ;;  %v1589_v35 = vpop.f32.mrf.mxu1  ;;  %v3515_v55 = vor.u32 %v3843_v52, %v3514_v25  ;;  %v3498_v0 = vld [vmem:[#allocation7 + $0x1d0] sm:$0xf]  ;;  %v3399_v20 = vor.u32 %v3812_v23, %v3396_v11  ;;  %v3842_v25 = vld [vmem:[#allocation7 + $0x1f4] sm:$0xf] }
 0x11f   :  { %v1590_v51 = vadd.f32 %v1589_v35, %v398_v38  ;;  %v3499_v7 = vor.u32 %v3839_v1, %v3498_v0  ;;  %v3474_v35 = vld [vmem:[#allocation7 + $0x1a0] sm:$0xf]  ;;  %v3834_v0 = vld [vmem:[#allocation7 + $0x1b4] sm:$0xf]  ;;  %v3484_v1 = vld [vmem:[#allocation7 + $0x1b8] sm:$0xf0] }
 0x120   :  { %2200 = vmatmul.bf16.vlgmr.msra.gmra.mxu1 %v1785_v24  ;;  %v1617_v40 = vpop.f32.mrf.mxu0  ;;  %2220 = vmatpush.bf16.msra.mxu0 %v3515_v55  ;;  %v3487_v5 = vor.u32 %v3834_v0, %v3484_v1  ;;  %v3830_v11 = vld [vmem:[#allocation7 + $0x194] sm:$0xf] }
 0x121   :  { %2242 = vmatmul.bf16.vlgmr.msrb.gmra.mxu3 %v4141_v4  ;;  %v3403_v4 = vor.u32 %v3815_v19, %v3402_v18 }
 0x123   :  { %2212 = vmatpush.bf16.msra.mxu2 %v3403_v4 }
 0x124   :  { %2221 = vmatpush.bf16.msra.mxu0 %v3507_v61  ;;  %v3492_v61 = vld [vmem:[#allocation7 + $0x1c8] sm:$0xf0] }
 0x126   :  { %v1603_v42 = vpop.f32.mrf.mxu3  ;;  %v1591_v48 = vpop.f32.mrf.mxu1 }
 0x127   :  { %2213 = vmatpush.bf16.msra.mxu2 %v3395_v31  ;;  %v1604_v62 = vadd.f32 %v1603_v42, %v1590_v51  ;;  %v1592_v63 = vadd.f32 %v1591_v48, %v398_v38  ;;  %v3482_v31 = vld [vmem:[#allocation7 + $0x1b0] sm:$0xf]  ;;  %v3467_v38 = vor.u32 %v3831_v47, %v3466_v46  ;;  %v3458_v48 = vld [vmem:[#allocation7 + $0x180] sm:$0xf]  ;;  %v3516_v51 = vld [vmem:[#allocation7 + $0x1f8] sm:$0xf0] }
 0x128   :  { %v1619_v53 = vpop.f32.mrf.mxu0  ;;  %2222 = vmatpush.bf16.msra.mxu0 %v3499_v7  ;;  %v3519_v52 = vor.u32 %v3842_v25, %v3516_v51  ;;  %v3851_v46 = vld [vmem:[#allocation8 + $0x38] sm:$0xff]  ;;  %v3850_v47 = vld [vmem:[#allocation8 + $0x30] sm:$0xff]  ;;  %v3845_v51 = vld [vmem:[#allocation8 + $0x8] sm:$0xff] }
 0x129   :  { %v1618_v8 = vadd.f32 %v1617_v40, %v1604_v62  ;;  %2425 = vmatpush.bf16.msra.mxu3 %v3851_v46  ;;  %v3858_v25 = vld [vmem:[#allocation8 + $0x70] sm:$0xff] }
 0x12b   :  { %2262 = vmatpush.bf16.msrb.mxu2 %v3455_v34  ;;  %v3483_v34 = vor.u32 %v3835_v30, %v3482_v31 }
 0x12c   :  { %2223 = vmatpush.bf16.msra.mxu0 %v3491_v16  ;;  %v3460_v16 = vld [vmem:[#allocation7 + $0x188] sm:$0xf0] }
 0x12d   :  { %2426 = vmatpush.bf16.msra.mxu3 %v3850_v47 }
 0x12e   :  { %v1605_v60 = vpop.f32.mrf.mxu3 }
 0x12f   :  { %2263 = vmatpush.bf16.msrb.mxu2 %v3447_v36  ;;  %v1631_v59 = vpop.f32.mrf.mxu2  ;;  %v1606_v9 = vadd.f32 %v1605_v60, %v1592_v63  ;;  %v3833_v36 = vld [vmem:[#allocation7 + $0x1a4] sm:$0xf0]  ;;  %v3836_v60 = vld [vmem:[#allocation7 + $0x1c4] sm:$0xf]  ;;  %v391_v63 = vperm.slane %v4145_v39, 4 }
 0x130   :  { %2256 = vmatmul.bf16.vlgmr.msrb.gmra.mxu1 %v1785_v24  ;;  %v1673_v14 = vpop.f32.mrf.mxu0  ;;  %v1632_v17 = vadd.f32 %v1631_v59, %v1618_v8  ;;  %2224 = vmatpush.bf16.msra.mxu0 %v3483_v34  ;;  %v3475_v42 = vor.u32 %v3833_v36, %v3474_v35  ;;  %v3503_v59 = vor.u32 %v3838_v26, %v3500_v56  ;;  %v3828_v39 = vld [vmem:[#allocation7 + $0x184] sm:$0xf]  ;;  %v3854_v26 = vld [vmem:[#allocation8 + $0x50] sm:$0xff] }
 0x131   :  { %v1620_v18 = vadd.f32 %v1619_v53, %v1606_v9  ;;  %v3840_v53 = vld [vmem:[#allocation7 + $0x1e4] sm:$0xf]  ;;  %v3495_v62 = vor.u32 %v3836_v60, %v3492_v61  ;;  %v399_v6 = vperm.slane %v391_v63, 0  ;;  %v1852_v60 = vperm.slane %v4128_v15, 1 }
 0x132   :  { %v3832_v9 = vld [vmem:[#allocation7 + $0x1a4] sm:$0xf] }
 0x133   :  { %2264 = vmatpush.bf16.msrb.mxu2 %v3439_v45  ;;  %v3852_v61 = vld [vmem:[#allocation8 + $0x40] sm:$0xff] }
 0x134   :  { %2225 = vmatpush.bf16.msra.mxu0 %v3475_v42 }
 0x137   :  { %2265 = vmatpush.bf16.msrb.mxu2 %v3431_v49  ;;  %v1633_v19 = vpop.f32.mrf.mxu2  ;;  %v3829_v49 = vld [vmem:[#allocation7 + $0x184] sm:$0xf0] }
 0x138   :  { %v1634_v24 = vadd.f32 %v1633_v19, %v1620_v18  ;;  %v1675_v40 = vpop.f32.mrf.mxu0  ;;  %2226 = vmatpush.bf16.msra.mxu0 %v3467_v38  ;;  %v3459_v50 = vor.u32 %v3829_v49, %v3458_v48  ;;  %v3849_v38 = vld [vmem:[#allocation8 + $0x28] sm:$0xff]  ;;  %v3848_v48 = vld [vmem:[#allocation8 + $0x20] sm:$0xff]  ;;  %v3847_v49 = vld [vmem:[#allocation8 + $0x18] sm:$0xff] }
 0x139   :  { %2427 = vmatpush.bf16.msra.mxu3 %v3849_v38 }
 0x13b   :  { %2266 = vmatpush.bf16.msrb.mxu2 %v3423_v54  ;;  %v3508_v54 = vld [vmem:[#allocation7 + $0x1e8] sm:$0xf0] }
 0x13c   :  { %2227 = vmatpush.bf16.msra.mxu0 %v3459_v50  ;;  %v3511_v55 = vor.u32 %v3840_v53, %v3508_v54  ;;  %v3859_v50 = vld [vmem:[#allocation8 + $0x78] sm:$0xff]  ;;  %v3844_v53 = vld [vmem:[#allocation8] sm:$0xff] }
 0x13d   :  { %2428 = vmatpush.bf16.msra.mxu3 %v3848_v48  ;;  %2439 = vmatpush.bf16.msra.mxu1 %v3859_v50  ;;  %v3856_v54 = vld [vmem:[#allocation8 + $0x60] sm:$0xff] }
 0x13e   :  { %v1645_v2 = vpop.f32.mrf.mxu1 }
 0x13f   :  { %2267 = vmatpush.bf16.msrb.mxu2 %v3415_v3  ;;  %v1646_v21 = vadd.f32 %v1645_v2, %v1632_v17 }
 0x140   :  { %2276 = vmatpush.bf16.msrb.mxu0 %v3519_v52  ;;  %v3857_v52 = vld [vmem:[#allocation8 + $0x68] sm:$0xff] }
 0x141   :  { %2429 = vmatpush.bf16.msra.mxu3 %v3847_v49  ;;  %2440 = vmatpush.bf16.msra.mxu1 %v3858_v25 }
 0x143   :  { %2268 = vmatpush.bf16.msrb.mxu2 %v3407_v10  ;;  %v3476_v10 = vld [vmem:[#allocation7 + $0x1a8] sm:$0xf0] }
 0x144   :  { %2277 = vmatpush.bf16.msrb.mxu0 %v3511_v55  ;;  %v1701_v57 = vpop.f32.mrf.mxu0  ;;  %v3479_v23 = vor.u32 %v3832_v9, %v3476_v10  ;;  %v3855_v55 = vld [vmem:[#allocation8 + $0x58] sm:$0xff] }
 0x145   :  { %2441 = vmatpush.bf16.msra.mxu1 %v3857_v52 }
 0x146   :  { %v1659_v22 = vpop.f32.mrf.mxu3  ;;  %v1647_v4 = vpop.f32.mrf.mxu1 }
 0x147   :  { %v1660_v27 = vadd.f32 %v1659_v22, %v1646_v21  ;;  %2269 = vmatpush.bf16.msrb.mxu2 %v3399_v20  ;;  %v1648_v28 = vadd.f32 %v1647_v4, %v1634_v24  ;;  %v3463_v21 = vor.u32 %v3828_v39, %v3460_v16 }
 0x148   :  { %2278 = vmatpush.bf16.msrb.mxu0 %v3503_v59  ;;  %v3853_v59 = vld [vmem:[#allocation8 + $0x48] sm:$0xff] }
 0x149   :  { %v1674_v32 = vadd.f32 %v1673_v14, %v1660_v27  ;;  %v3471_v14 = vor.u32 %v3830_v11, %v3468_v12  ;;  %2442 = vmatpush.bf16.msra.mxu1 %v3856_v54 }
 0x14b   :  { %v1778_v43 = vmax.f32 %v1674_v32, 0.0 }
 0x14c   :  { %2279 = vmatpush.bf16.msrb.mxu0 %v3495_v62  ;;  %v1703_v7 = vpop.f32.mrf.mxu0  ;;  %v1856_v62 = vperm.slane %v1852_v60, 1 }
 0x14d   :  { %2443 = vmatpush.bf16.msra.mxu1 %v3855_v55 }
 0x14e   :  { %v1661_v29 = vpop.f32.mrf.mxu3 }
 0x14f   :  { %v1662_v33 = vadd.f32 %v1661_v29, %v1648_v28  ;;  %v1687_v37 = vpop.f32.mrf.mxu2 }
 0x150   :  { %2280 = vmatpush.bf16.msrb.mxu0 %v3487_v5  ;;  %v1688_v13 = vadd.f32 %v1687_v37, %v399_v6  ;;  %v3846_v37 = vld [vmem:[#allocation8 + $0x10] sm:$0xff] }
 0x151   :  { %v1676_v41 = vadd.f32 %v1675_v40, %v1662_v33  ;;  %2430 = vmatpush.bf16.msra.mxu3 %v3846_v37  ;;  %2444 = vmatpush.bf16.msra.mxu1 %v3854_v26 }
 0x152   :  { %v1702_v18 = vadd.f32 %v1701_v57, %v1688_v13  ;;  %v1853_v13 = vperm.slane %v4128_v15, 5 }
 0x153   :  { %v1782_v44 = vmax.f32 %v1676_v41, 0.0 }
 0x154   :  { %2281 = vmatpush.bf16.msrb.mxu0 %v3479_v23 }
 0x155   :  { %v1786_v45 = vpack.c.bf16 %v1782_v44, %v1778_v43  ;;  %2431 = vmatpush.bf16.msra.mxu3 %v3845_v51  ;;  %2445 = vmatpush.bf16.msra.mxu1 %v3853_v59 }
 0x157   :  { %2214 = vmatmul.bf16.vlgmr.msra.gmra.mxu2 %v1786_v45  ;;  %v1689_v58 = vpop.f32.mrf.mxu2 }
 0x158   :  { %v1690_v22 = vadd.f32 %v1689_v58, %v399_v6  ;;  %2282 = vmatpush.bf16.msrb.mxu0 %v3471_v14 }
 0x159   :  { %2432 = vmatpush.bf16.msra.mxu3 %v3844_v53  ;;  %2446 = vmatpush.bf16.msra.mxu1 %v3852_v61 }
 0x15a   :  { %v1704_v4 = vadd.f32 %v1703_v7, %v1690_v22 }
 0x15c   :  { %2283 = vmatpush.bf16.msrb.mxu0 %v3463_v21 }
 0x15e   :  { %v1715_v2 = vpop.f32.mrf.mxu1 }
 0x15f   :  { %v1716_v24 = vadd.f32 %v1715_v2, %v1702_v18 }
 0x164   :  { %v1757_v20 = vpop.f32.mrf.mxu0 }
 0x166   :  { %v1729_v8 = vpop.f32.mrf.mxu3  ;;  %v1717_v19 = vpop.f32.mrf.mxu1 }
 0x167   :  { %2270 = vmatmul.bf16.vlgmr.msrb.gmra.mxu2 %v1786_v45  ;;  %v1730_v28 = vadd.f32 %v1729_v8, %v1716_v24  ;;  %v1718_v29 = vadd.f32 %v1717_v19, %v1704_v4 }
 0x16c   :  { %v1759_v34 = vpop.f32.mrf.mxu0 }
 0x16e   :  { %v1731_v27 = vpop.f32.mrf.mxu3 }
 0x16f   :  { %v1743_v3 = vpop.f32.mrf.mxu2  ;;  %v1732_v31 = vadd.f32 %v1731_v27, %v1718_v29 }
 0x170   :  { %v1744_v32 = vadd.f32 %v1743_v3, %v1730_v28 }
 0x172   :  { %v1758_v35 = vadd.f32 %v1757_v20, %v1744_v32 }
 0x177   :  { %v1745_v17 = vpop.f32.mrf.mxu2 }
 0x178   :  { %v1746_v33 = vadd.f32 %v1745_v17, %v1732_v31  ;;  %v1857_v17 = vperm.slane %v1853_v13, 1 }
 0x17a   :  { %v1760_v36 = vadd.f32 %v1759_v34, %v1746_v33 }
 0x17f   :  { %v1771_v30 = vpop.f32.mrf.mxu2 }
 0x180   :  { %v1772_v40 = vadd.f32 %v1771_v30, %v1758_v35 }
 0x182   :  { %v1779_v43 = vmax.f32 %v1772_v40, 0.0 }
 0x184   :  { %v2187_v56 = vpop.f32.mrf.mxu3 }
 0x185   :  { %v2188_v3 = vadd.f32 %v2187_v56, %v1856_v62 }
 0x187   :  { %v1773_v41 = vpop.f32.mrf.mxu2 }
 0x188   :  { %v1774_v42 = vadd.f32 %v1773_v41, %v1760_v36 }
 0x18a   :  { %v1783_v44 = vmax.f32 %v1774_v42, 0.0  ;;  %v2328_v42 = vperm.slane %v4128_v15, 2 }
 0x18c   :  { %v1787_v45 = vpack.c.bf16 %v1783_v44, %v1779_v43  ;;  %v2189_v63 = vpop.f32.mrf.mxu3 }
 0x18d   :  { %v2190_v5 = vadd.f32 %v2189_v63, %v1856_v62 }
 0x18e   :  { %2228 = vmatmul.bf16.vlgmr.msra.gmra.mxu0 %v1787_v45 }
 0x19d   :  { %v2201_v57 = vpop.f32.mrf.mxu1 }
 0x19e   :  { %2284 = vmatmul.bf16.vlgmr.msrb.gmra.mxu0 %v1787_v45  ;;  %v2202_v6 = vadd.f32 %v2201_v57, %v2188_v3 }
 0x1a4   :  { %v2243_v9 = vpop.f32.mrf.mxu3 }
 0x1a5   :  { %v2203_v0 = vpop.f32.mrf.mxu1  ;;  %v2244_v21 = vadd.f32 %v2243_v9, %v1857_v17 }
 0x1a6   :  { %v2204_v7 = vadd.f32 %v2203_v0, %v2190_v5 }
 0x1ac   :  { %v2245_v19 = vpop.f32.mrf.mxu3 }
 0x1ad   :  { %v2257_v11 = vpop.f32.mrf.mxu1  ;;  %v2246_v24 = vadd.f32 %v2245_v19, %v1857_v17 }
 0x1ae   :  { %v2258_v27 = vadd.f32 %v2257_v11, %v2244_v21 }
 0x1b5   :  { %v2259_v4 = vpop.f32.mrf.mxu1 }
 0x1b6   :  { %v2260_v29 = vadd.f32 %v2259_v4, %v2246_v24 }
 0x1da   :  { %v2215_v58 = vpop.f32.mrf.mxu2 }
 0x1db   :  { %v2216_v8 = vadd.f32 %v2215_v58, %v2202_v6 }
 0x1e2   :  { %v2217_v1 = vpop.f32.mrf.mxu2 }
 0x1e3   :  { %v2218_v10 = vadd.f32 %v2217_v1, %v2204_v7 }
 0x1ea   :  { %v2271_v22 = vpop.f32.mrf.mxu2 }
 0x1eb   :  { %v2272_v31 = vadd.f32 %v2271_v22, %v2258_v27 }
 0x1f2   :  { %v2273_v28 = vpop.f32.mrf.mxu2 }
 0x1f3   :  { %v2274_v30 = vadd.f32 %v2273_v28, %v2260_v29 }
 0x20b   :  { %v2229_v2 = vpop.f32.mrf.mxu0 }
 0x20c   :  { %v2230_v23 = vadd.f32 %v2229_v2, %v2216_v8 }
 0x20e   :  { %v2290_v39 = vmax.f32 %v2230_v23, 0.0 }
 0x213   :  { %v2231_v12 = vpop.f32.mrf.mxu0 }
 0x214   :  { %v2232_v14 = vadd.f32 %v2231_v12, %v2218_v10 }
 0x216   :  { %v2292_v16 = vmax.f32 %v2232_v14, 0.0 }
 0x218   :  { %v2294_v18 = vpack.c.bf16 %v2292_v16, %v2290_v39 }
 0x21a   :  { %2433 = vmatmul.bf16.vlgmr.msra.gmra.mxu3 %v2294_v18 }
 0x21b   :  { %v2285_v20 = vpop.f32.mrf.mxu0 }
 0x21c   :  { %v2286_v32 = vadd.f32 %v2285_v20, %v2272_v31 }
 0x21e   :  { %v2291_v35 = vmax.f32 %v2286_v32, 0.0 }
 0x223   :  { %v2287_v33 = vpop.f32.mrf.mxu0 }
 0x224   :  { %v2288_v34 = vadd.f32 %v2287_v33, %v2274_v30 }
 0x226   :  { %v2293_v36 = vmax.f32 %v2288_v34, 0.0 }
 0x228   :  { %v2295_v40 = vpack.c.bf16 %v2293_v36, %v2291_v35 }
 0x22a   :  { %2447 = vmatmul.bf16.vlgmr.msra.gmra.mxu1 %v2295_v40 }
 0x29d   :  { %v2434_v41 = vpop.f32.mrf.mxu3 }
 0x29e   :  { %v2435_v43 = vadd.f32 %v2434_v41, %v2328_v42 }
 0x2a5   :  { %v2436_v46 = vpop.f32.mrf.mxu3 }
 0x2a6   :  { %v2437_v47 = vadd.f32 %v2436_v46, %v2328_v42 }
 0x2a7   :  { %v2448_v44 = vpop.f32.mrf.mxu1 }
 0x2a8   :  { %v2449_v45 = vadd.f32 %v2448_v44, %v2435_v43 }
 0x2aa   :  { %2453 = vst [vmem:[#allocation11] sm:$0xff] %v2449_v45 }
 0x2af   :  { %v2450_v38 = vpop.f32.mrf.mxu1 }
 0x2b0   :  { %v2451_v48 = vadd.f32 %v2450_v38, %v2437_v47 }
 0x2b2   :  { %2454 = vst [vmem:[#allocation11 + $0x8] sm:$0xff] %v2451_v48 }
 0x2b3   :  { %2458 = vsyncadd [#allocation4], 192  ;;  %s2461_s23 = sshll.u32 %s4163_s5, 4  ;;  %s4039_s24 = smov [#allocation11]   ;;  %s2462_s23 = int_to_ptr.hbm [resolvable:$true] %s2461_s23 }
 0x2b4   :  { %s2459_s25 = sshll.u32 %s4039_s24, 4  ;;  %s2460_s25 = int_to_ptr.vmem [resolvable:$true] %s2459_s25 }
 0x2b5   :  { %2467 = dma.vmem_to_hbm [thread:$0]  %s2460_s25, 64, %s2462_s23, [#allocation4], %s4030_s30, %s4030_s30, %s4031_s6  }
 0x2b6   :  { %4024 = dma.done.wait [#allocation4], 256  }
 0x2b7   :  { %4025 = vsyncadd [#allocation4], 4294967040 }
 0x2b8   :  { %2472 = vsyncpa [#allocation3], 1 }
 0x2b9   :  { %2473 = vsyncpa [#allocation6], 1 }
 0x2ba   :  { %2474 = vsyncpa [#allocation9], 1 }
 0x2bb   :  { %2475 = vsyncpa [#allocation4], 1 }

</bundles_post_ra>
